<compile_context>
chip_gen: v7x
topology: tpu7x:2x2x1
jax: 0.10.0
libtpu: 0.0.40
codegen_flags: <defaults>
</compile_context>

<pallas_src>
import numpy as np
import jax
import jax.numpy as jnp
from jax.experimental import pallas as pl
from jax.experimental.pallas import tpu as pltpu


def _elu(y):
    # ELU(alpha=1); exp argument clamped so the untaken branch cannot overflow.
    return jnp.where(y > 0, y, jnp.exp(jnp.minimum(y, 0.0)) - 1.0)


# ----------------------------------------------------------------------------
# Fused Pallas kernel: [conv + BN-shift + ELU (+ SE)] x layers, one batch elem
# ----------------------------------------------------------------------------
def _make_core_kernel(H, W, layer_dims, se_layers):
    """layer_dims: [(K, Cin, Cout)] per layer; se_layers: set of SE layer idx."""
    L = len(layer_dims)

    def kernel(*refs):
        it = iter(refs)
        x_ref = next(it)                                        # (1, H, W*Cin0)
        conv_refs = [(next(it), next(it)) for _ in range(L)]    # (banded w, shift)
        se_refs = {l: (next(it), next(it), next(it), next(it))  # w1, b1, w2, b2
                   for l in range(L) if l in se_layers}
        ssum_ref = next(it)          # (W*C, C): sums the W copies of each channel
        sbc_ref = next(it)           # (C, W*C): broadcasts a channel vec W times
        o_ref = next(it)             # (1, L, H, W*C)
        pad_refs = [next(it) for _ in range(L)]                 # height-pad scratch

        cur = x_ref[0]                                          # (H, W*Cin0) f32
        for l, (K, Cin, Cout) in enumerate(layer_dims):
            pad = K // 2
            pr = pad_refs[l]                                    # (H+2p, W*Cin) f32
            # In-kernel "same" height padding: memset + full-lane interior store.
            pr[...] = jnp.zeros(pr.shape, jnp.float32)
            pr[pad:pad + H, :] = cur

            wb_ref, sh_ref = conv_refs[l]
            acc = jnp.zeros((H, W * Cout), jnp.float32)
            for ky in range(K):       # K deep, lane-dense MXU matmuls, f32 accum
                band = pr[ky:ky + H, :].astype(jnp.bfloat16)    # (H, W*Cin)
                acc = acc + jnp.dot(band, wb_ref[ky],
                                    preferred_element_type=jnp.float32)

            y = acc + sh_ref[...]     # BatchNorm (scale already folded into wb)
            y = _elu(y)

            if l in se_layers:                                  # Squeeze-Excitation
                w1_ref, b1_ref, w2_ref, b2_ref = se_refs[l]
                col = jnp.mean(y, axis=0, keepdims=True)        # (1, W*C)
                s = jnp.dot(col, ssum_ref[...],
                            preferred_element_type=jnp.float32) * (1.0 / W)
                h = jnp.maximum(
                    jnp.dot(s, w1_ref[...],
                            preferred_element_type=jnp.float32) + b1_ref[...],
                    0.0)
                z = jnp.dot(h, w2_ref[...],
                            preferred_element_type=jnp.float32) + b2_ref[...]
                g = 1.0 / (1.0 + jnp.exp(-z))                   # sigmoid gate
                gate = jnp.dot(g, sbc_ref[...],
                               preferred_element_type=jnp.float32)  # (1, W*C)
                y = y * gate

            o_ref[0, l] = y                    # lane-dense (H, W*C) store
            cur = y

    return kernel


# ----------------------------------------------------------------------------
# Host-side parameter preparation
# ----------------------------------------------------------------------------
def _build_banded_weight(w, scale, W):
    """w: (K,K,Cin,Cout), scale: (Cout,).  Returns:
       wb  : (K, W*Cin, W*Cout) bf16 block-banded weight (BN scale folded,
             width "same"-padding folded in as zero bands),
       w_q : (K,K,Cin,Cout) f32 holding the exact bf16-rounded folded weights
             (used by the pure-JAX reference)."""
    K, _, Cin, Cout = w.shape
    assert K % 2 == 1, "only odd kernels give 'same' output (as in the module)"
    pad = K // 2
    w_sc = np.asarray(w, np.float32) * np.asarray(scale, np.float32)[None, None, None, :]
    w_q = np.asarray(jnp.asarray(w_sc).astype(jnp.bfloat16).astype(jnp.float32))
    wb = np.zeros((K, W * Cin, W * Cout), np.float32)
    for ky in range(K):
        for x in range(W):
            for kx in range(K):
                xw = x + kx - pad
                if 0 <= xw < W:
                    wb[ky, xw * Cin:(xw + 1) * Cin,
                       x * Cout:(x + 1) * Cout] = w_q[ky, kx]
    return jnp.asarray(wb, jnp.bfloat16), jnp.asarray(w_q, jnp.float32)


def prepare_params(params, W):
    """Fold BN scale into weights, build block-banded bf16 weights, tile the BN
    shift to the (W*C) lane layout, build SE helper matrices."""
    layers = []
    Cout = None
    for p in params["layers"]:
        wb, w_q = _build_banded_weight(p["w"], p["scale"], W)
        Cout = p["w"].shape[3]
        lay = {
            "wb": wb,
            "w_q": w_q,
            "shift": p["shift"],
            "shift_tiled": jnp.tile(p["shift"].reshape(1, Cout), (1, W)),
        }
        if "se" in p:
            w1, b1, w2, b2 = p["se"]
            lay["se"] = (w1, b1.reshape(1, -1), w2, b2.reshape(1, -1))
        layers.append(lay)
    eye = np.eye(Cout, dtype=np.float32)
    return {"layers": layers,
            "s_sum": jnp.asarray(np.tile(eye, (W, 1))),   # (W*C, C)
            "s_bc": jnp.asarray(np.tile(eye, (1, W)))}    # (C, W*C)


# ----------------------------------------------------------------------------
# SE2dCore forward (stack = all layers -> channel concat)
# ----------------------------------------------------------------------------
def se2d_core_forward(x_nhwc, prepped):
    """x_nhwc: (N, H, W, Cin) f32 -> (N, H, W, layers*Cout) f32 (NHWC concat)."""
    N, H, W, Cin0 = x_nhwc.shape
    L = len(prepped["layers"])

    layer_dims = []
    se_layers = set()
    in_specs = [pl.BlockSpec((1, H, W * Cin0), lambda n: (n, 0, 0))]
    args = [x_nhwc.reshape(N, H, W * Cin0)]
    Cout = None
    for l, lay in enumerate(prepped["layers"]):
        K, WCin, WC = lay["wb"].shape
        Cin = WCin // W
        Cout = WC // W
        layer_dims.append((K, Cin, Cout))
        in_specs += [pl.BlockSpec((K, WCin, WC), lambda n: (0, 0, 0)),
                     pl.BlockSpec((1, WC), lambda n: (0, 0))]
        args += [lay["wb"], lay["shift_tiled"]]
        if "se" in lay:
            se_layers.add(l)
    for l, lay in enumerate(prepped["layers"]):
        if "se" in lay:
            w1, b1, w2, b2 = lay["se"]
            in_specs += [pl.BlockSpec(w1.shape, lambda n: (0, 0)),
                         pl.BlockSpec(b1.shape, lambda n: (0, 0)),
                         pl.BlockSpec(w2.shape, lambda n: (0, 0)),
                         pl.BlockSpec(b2.shape, lambda n: (0, 0))]
            args += [w1, b1, w2, b2]
    in_specs += [pl.BlockSpec(prepped["s_sum"].shape, lambda n: (0, 0)),
                 pl.BlockSpec(prepped["s_bc"].shape, lambda n: (0, 0))]
    args += [prepped["s_sum"], prepped["s_bc"]]

    scratch = [pltpu.VMEM((H + 2 * (K // 2), W * Cin), jnp.float32)
               for (K, Cin, _) in layer_dims]

    kernel = _make_core_kernel(H, W, layer_dims, se_layers)
    out = pl.pallas_call(
        kernel,
        out_shape=jax.ShapeDtypeStruct((N, L, H, W * Cout), jnp.float32),
        grid=(N,),
        in_specs=in_specs,
        out_specs=pl.BlockSpec((1, L, H, W * Cout), lambda n: (n, 0, 0, 0)),
        scratch_shapes=scratch,
        compiler_params=pltpu.CompilerParams(
            dimension_semantics=("parallel",)),
    )(*args)

    # (N, L, H, W*C) -> (N, H, W, L*C): channel-wise concat of the stacked layers.
    out = out.reshape(N, L, H, W, Cout).transpose(0, 2, 3, 1, 4)
    return out.reshape(N, H, W, L * Cout)


# ----------------------------------------------------------------------------
# Deterministic synthetic parameters (no checkpoint load)
# ----------------------------------------------------------------------------
def init_params(key, input_channels, hidden_channels, input_kern, hidden_kern,
                layers, se_reduction, n_se_blocks):
    eps = 1e-5
    params = {"layers": []}
    for l in range(layers):
        key, k_w, k_g, k_b, k_m, k_v, k1, k2, k3, k4 = jax.random.split(key, 10)
        K = input_kern if l == 0 else hidden_kern
        Cin = input_channels if l == 0 else hidden_channels
        Cout = hidden_channels
        w = jax.random.normal(k_w, (K, K, Cin, Cout), jnp.float32)
        w = w * (1.0 / np.sqrt(K * K * Cin))
        # BatchNorm (eval mode) -> folded affine scale/shift.
        gamma = 1.0 + 0.1 * jax.random.normal(k_g, (Cout,), jnp.float32)
        beta = 0.1 * jax.random.normal(k_b, (Cout,), jnp.float32)
        rmean = 0.1 * jax.random.normal(k_m, (Cout,), jnp.float32)
        rvar = 1.0 + 0.5 * jax.random.uniform(k_v, (Cout,), jnp.float32)
        scale = gamma / jnp.sqrt(rvar + eps)
        shift = beta - rmean * scale
        p = {"w": w, "scale": scale, "shift": shift}
        if layers - l <= n_se_blocks:                 # SE on the last block(s)
            Cr = Cout // se_reduction
            w1 = jax.random.normal(k1, (Cout, Cr), jnp.float32) / np.sqrt(Cout)
            b1 = 0.1 * jax.random.normal(k2, (Cr,), jnp.float32)
            w2 = jax.random.normal(k3, (Cr, Cout), jnp.float32) / np.sqrt(Cr)
            b2 = 0.1 * jax.random.normal(k4, (Cout,), jnp.float32)
            p["se"] = (w1, b1, w2, b2)
        params["layers"].append(p)
    return params


# ----------------------------------------------------------------------------
# Pure-JAX reference (mirrors the kernel's bf16 matmul-operand quantization)
# ----------------------------------------------------------------------------
def reference_forward(x, prepped):
    ret = []
    h = x
    for lay in prepped["layers"]:
        K = lay["w_q"].shape[0]
        pad = K // 2
        h_q = h.astype(jnp.bfloat16).astype(jnp.float32)   # bf16 MXU operands
        h = jax.lax.conv_general_dilated(
            h_q, lay["w_q"], window_strides=(1, 1),
            padding=[(pad, pad), (pad, pad)],
            dimension_numbers=("NHWC", "HWIO", "NHWC"),
            preferred_element_type=jnp.float32)
        h = h + lay["shift"]
        h = _elu(h)
        if "se" in lay:
            w1, b1, w2, b2 = lay["se"]
            s = jnp.mean(h, axis=(1, 2))                    # (N, C)
            a = jnp.maximum(s @ w1 + b1, 0.0)
            g = 1.0 / (1.0 + jnp.exp(-(a @ w2 + b2)))
            h = h * g[:, None, None, :]
        ret.append(h)
    return jnp.concatenate(ret, axis=-1)


if __name__ == "__main__":
    # Small shapes consistent with the module's forward (PyTorch is NCHW).
    N, Cin, H, W = 2, 4, 16, 16
    hidden_channels = 16
    input_kern, hidden_kern = 5, 3
    layers, se_reduction, n_se_blocks = 3, 4, 1

    key = jax.random.PRNGKey(0)
    key, kx = jax.random.split(key)
    x_nchw = jax.random.normal(kx, (N, Cin, H, W), jnp.float32)   # PyTorch layout
    x = jnp.transpose(x_nchw, (0, 2, 3, 1))                       # kernel layout NHWC

    params = init_params(key, Cin, hidden_channels, input_kern, hidden_kern,
                         layers, se_reduction, n_se_blocks)
    prepped = prepare_params(params, W)

    fwd = jax.jit(se2d_core_forward)
    out = jax.block_until_ready(fwd(x, prepped))

    assert out.shape == (N, H, W, layers * hidden_channels), out.shape
    ref = reference_forward(x, prepped)
    np.testing.assert_allclose(np.asarray(out), np.asarray(ref),
                               atol=1e-3, rtol=1e-3)
    print("KERNEL_OK")
</pallas_src>

<mosaic_0001>
module attributes {stable_mosaic.version = 11 : i64} {
  func.func @kernel(%arg0: i32, %arg1: memref<1x16x64xf32, #tpu.memory_space<vmem>>, %arg2: memref<5x64x256xbf16, #tpu.memory_space<vmem>>, %arg3: memref<1x256xf32, #tpu.memory_space<vmem>>, %arg4: memref<3x256x256xbf16, #tpu.memory_space<vmem>>, %arg5: memref<1x256xf32, #tpu.memory_space<vmem>>, %arg6: memref<3x256x256xbf16, #tpu.memory_space<vmem>>, %arg7: memref<1x256xf32, #tpu.memory_space<vmem>>, %arg8: memref<16x4xf32, #tpu.memory_space<vmem>>, %arg9: memref<1x4xf32, #tpu.memory_space<vmem>>, %arg10: memref<4x16xf32, #tpu.memory_space<vmem>>, %arg11: memref<1x16xf32, #tpu.memory_space<vmem>>, %arg12: memref<256x16xf32, #tpu.memory_space<vmem>>, %arg13: memref<16x256xf32, #tpu.memory_space<vmem>>, %arg14: memref<1x3x16x256xf32, #tpu.memory_space<vmem>>, %arg15: memref<20x64xf32, #tpu.memory_space<vmem>>, %arg16: memref<18x256xf32, #tpu.memory_space<vmem>>, %arg17: memref<18x256xf32, #tpu.memory_space<vmem>>) attributes {dimension_semantics = [#tpu.dimension_semantics<parallel>], iteration_bounds = array<i64: 2>, scalar_prefetch = 0 : i64, scratch_operands = 3 : i64, tpu.core_type = #tpu.core_type<tc>, window_params = [{transform_indices = @transform_0, window_bounds = array<i64: 1, 16, 64>}, {pipeline_mode = #tpu.pipeline_mode<synchronous>, transform_indices = @transform_1, window_bounds = array<i64: 5, 64, 256>}, {pipeline_mode = #tpu.pipeline_mode<synchronous>, transform_indices = @transform_2, window_bounds = array<i64: 1, 256>}, {pipeline_mode = #tpu.pipeline_mode<synchronous>, transform_indices = @transform_3, window_bounds = array<i64: 3, 256, 256>}, {pipeline_mode = #tpu.pipeline_mode<synchronous>, transform_indices = @transform_4, window_bounds = array<i64: 1, 256>}, {pipeline_mode = #tpu.pipeline_mode<synchronous>, transform_indices = @transform_5, window_bounds = array<i64: 3, 256, 256>}, {pipeline_mode = #tpu.pipeline_mode<synchronous>, transform_indices = @transform_6, window_bounds = array<i64: 1, 256>}, {pipeline_mode = #tpu.pipeline_mode<synchronous>, transform_indices = @transform_7, window_bounds = array<i64: 16, 4>}, {pipeline_mode = #tpu.pipeline_mode<synchronous>, transform_indices = @transform_8, window_bounds = array<i64: 1, 4>}, {pipeline_mode = #tpu.pipeline_mode<synchronous>, transform_indices = @transform_9, window_bounds = array<i64: 4, 16>}, {pipeline_mode = #tpu.pipeline_mode<synchronous>, transform_indices = @transform_10, window_bounds = array<i64: 1, 16>}, {pipeline_mode = #tpu.pipeline_mode<synchronous>, transform_indices = @transform_11, window_bounds = array<i64: 256, 16>}, {pipeline_mode = #tpu.pipeline_mode<synchronous>, transform_indices = @transform_12, window_bounds = array<i64: 16, 256>}, {transform_indices = @transform_13, window_bounds = array<i64: 1, 3, 16, 256>}]} {
    %c0 = arith.constant 0 : index
    %c0_0 = arith.constant 0 : index
    %c0_1 = arith.constant 0 : index
    %0 = vector.load %arg1[%c0, %c0_0, %c0_1] : memref<1x16x64xf32, #tpu.memory_space<vmem>>, vector<1x16x64xf32>
    %1 = vector.shape_cast %0 : vector<1x16x64xf32> to vector<16x64xf32>
    %cst = arith.constant 0.000000e+00 : f32
    %2 = vector.broadcast %cst : f32 to vector<20x64xf32>
    %c0_2 = arith.constant 0 : index
    %c0_3 = arith.constant 0 : index
    %3 = vector.load %arg15[%c0_2, %c0_3] : memref<20x64xf32, #tpu.memory_space<vmem>>, vector<20x64xf32>
    tpu.vector_store %arg15[%c0_2, %c0_3], %2 {strides = array<i32>} : memref<20x64xf32, #tpu.memory_space<vmem>>, vector<20x64xf32>,
    %c2 = arith.constant 2 : index
    %c0_4 = arith.constant 0 : index
    %4 = vector.load %arg15[%c2, %c0_4] : memref<20x64xf32, #tpu.memory_space<vmem>>, vector<16x64xf32>
    tpu.vector_store %arg15[%c2, %c0_4], %1 {strides = array<i32>} : memref<20x64xf32, #tpu.memory_space<vmem>>, vector<16x64xf32>,
    %cst_5 = arith.constant 0.000000e+00 : f32
    %5 = vector.broadcast %cst_5 : f32 to vector<16x256xf32>
    %c0_6 = arith.constant 0 : index
    %c0_7 = arith.constant 0 : index
    %6 = vector.load %arg15[%c0_6, %c0_7] : memref<20x64xf32, #tpu.memory_space<vmem>>, vector<16x64xf32>
    %7 = arith.truncf %6 : vector<16x64xf32> to vector<16x64xbf16>
    %c0_8 = arith.constant 0 : index
    %c0_9 = arith.constant 0 : index
    %c0_10 = arith.constant 0 : index
    %8 = vector.load %arg2[%c0_8, %c0_9, %c0_10] : memref<5x64x256xbf16, #tpu.memory_space<vmem>>, vector<1x64x256xbf16>
    %9 = vector.shape_cast %8 : vector<1x64x256xbf16> to vector<64x256xbf16>
    %cst_11 = arith.constant dense<0.000000e+00> : vector<16x256xf32>
    %10 = tpu.matmul %7, %9, %cst_11 {dimension_numbers = #tpu.dot_dimension_numbers<[1], [0], [0], [1], [0, 0, 1, 1], [], []>} : vector<16x64xbf16>, vector<64x256xbf16>, vector<16x256xf32> -> vector<16x256xf32>
    %11 = arith.addf %5, %10 : vector<16x256xf32>
    %c1 = arith.constant 1 : index
    %c0_12 = arith.constant 0 : index
    %12 = vector.load %arg15[%c1, %c0_12] : memref<20x64xf32, #tpu.memory_space<vmem>>, vector<16x64xf32>
    %13 = arith.truncf %12 : vector<16x64xf32> to vector<16x64xbf16>
    %c1_13 = arith.constant 1 : index
    %c0_14 = arith.constant 0 : index
    %c0_15 = arith.constant 0 : index
    %14 = vector.load %arg2[%c1_13, %c0_14, %c0_15] : memref<5x64x256xbf16, #tpu.memory_space<vmem>>, vector<1x64x256xbf16>
    %15 = vector.shape_cast %14 : vector<1x64x256xbf16> to vector<64x256xbf16>
    %cst_16 = arith.constant dense<0.000000e+00> : vector<16x256xf32>
    %16 = tpu.matmul %13, %15, %cst_16 {dimension_numbers = #tpu.dot_dimension_numbers<[1], [0], [0], [1], [0, 0, 1, 1], [], []>} : vector<16x64xbf16>, vector<64x256xbf16>, vector<16x256xf32> -> vector<16x256xf32>
    %17 = arith.addf %11, %16 : vector<16x256xf32>
    %c2_17 = arith.constant 2 : index
    %c0_18 = arith.constant 0 : index
    %18 = vector.load %arg15[%c2_17, %c0_18] : memref<20x64xf32, #tpu.memory_space<vmem>>, vector<16x64xf32>
    %19 = arith.truncf %18 : vector<16x64xf32> to vector<16x64xbf16>
    %c2_19 = arith.constant 2 : index
    %c0_20 = arith.constant 0 : index
    %c0_21 = arith.constant 0 : index
    %20 = vector.load %arg2[%c2_19, %c0_20, %c0_21] : memref<5x64x256xbf16, #tpu.memory_space<vmem>>, vector<1x64x256xbf16>
    %21 = vector.shape_cast %20 : vector<1x64x256xbf16> to vector<64x256xbf16>
    %cst_22 = arith.constant dense<0.000000e+00> : vector<16x256xf32>
    %22 = tpu.matmul %19, %21, %cst_22 {dimension_numbers = #tpu.dot_dimension_numbers<[1], [0], [0], [1], [0, 0, 1, 1], [], []>} : vector<16x64xbf16>, vector<64x256xbf16>, vector<16x256xf32> -> vector<16x256xf32>
    %23 = arith.addf %17, %22 : vector<16x256xf32>
    %c3 = arith.constant 3 : index
    %c0_23 = arith.constant 0 : index
    %24 = vector.load %arg15[%c3, %c0_23] : memref<20x64xf32, #tpu.memory_space<vmem>>, vector<16x64xf32>
    %25 = arith.truncf %24 : vector<16x64xf32> to vector<16x64xbf16>
    %c3_24 = arith.constant 3 : index
    %c0_25 = arith.constant 0 : index
    %c0_26 = arith.constant 0 : index
    %26 = vector.load %arg2[%c3_24, %c0_25, %c0_26] : memref<5x64x256xbf16, #tpu.memory_space<vmem>>, vector<1x64x256xbf16>
    %27 = vector.shape_cast %26 : vector<1x64x256xbf16> to vector<64x256xbf16>
    %cst_27 = arith.constant dense<0.000000e+00> : vector<16x256xf32>
    %28 = tpu.matmul %25, %27, %cst_27 {dimension_numbers = #tpu.dot_dimension_numbers<[1], [0], [0], [1], [0, 0, 1, 1], [], []>} : vector<16x64xbf16>, vector<64x256xbf16>, vector<16x256xf32> -> vector<16x256xf32>
    %29 = arith.addf %23, %28 : vector<16x256xf32>
    %c4 = arith.constant 4 : index
    %c0_28 = arith.constant 0 : index
    %30 = vector.load %arg15[%c4, %c0_28] : memref<20x64xf32, #tpu.memory_space<vmem>>, vector<16x64xf32>
    %31 = arith.truncf %30 : vector<16x64xf32> to vector<16x64xbf16>
    %c4_29 = arith.constant 4 : index
    %c0_30 = arith.constant 0 : index
    %c0_31 = arith.constant 0 : index
    %32 = vector.load %arg2[%c4_29, %c0_30, %c0_31] : memref<5x64x256xbf16, #tpu.memory_space<vmem>>, vector<1x64x256xbf16>
    %33 = vector.shape_cast %32 : vector<1x64x256xbf16> to vector<64x256xbf16>
    %cst_32 = arith.constant dense<0.000000e+00> : vector<16x256xf32>
    %34 = tpu.matmul %31, %33, %cst_32 {dimension_numbers = #tpu.dot_dimension_numbers<[1], [0], [0], [1], [0, 0, 1, 1], [], []>} : vector<16x64xbf16>, vector<64x256xbf16>, vector<16x256xf32> -> vector<16x256xf32>
    %35 = arith.addf %29, %34 : vector<16x256xf32>
    %c0_33 = arith.constant 0 : index
    %c0_34 = arith.constant 0 : index
    %36 = vector.load %arg3[%c0_33, %c0_34] : memref<1x256xf32, #tpu.memory_space<vmem>>, vector<1x256xf32>
    %37 = vector.broadcast %36 : vector<1x256xf32> to vector<16x256xf32>
    %38 = arith.addf %35, %37 : vector<16x256xf32>
    %cst_35 = arith.constant 0.000000e+00 : f32
    %39 = vector.broadcast %cst_35 : f32 to vector<16x256xf32>
    %40 = arith.cmpf ogt, %38, %39 : vector<16x256xf32>
    %cst_36 = arith.constant 0.000000e+00 : f32
    %41 = vector.broadcast %cst_36 : f32 to vector<16x256xf32>
    %42 = arith.minimumf %38, %41 : vector<16x256xf32>
    %43 = math.exp %42 : vector<16x256xf32>
    %cst_37 = arith.constant 1.000000e+00 : f32
    %44 = vector.broadcast %cst_37 : f32 to vector<16x256xf32>
    %45 = arith.subf %43, %44 : vector<16x256xf32>
    %46 = arith.select %40, %38, %45 : vector<16x256xi1>, vector<16x256xf32>
    %c0_38 = arith.constant 0 : index
    %c0_39 = arith.constant 0 : index
    %c0_40 = arith.constant 0 : index
    %c0_41 = arith.constant 0 : index
    %47 = vector.load %arg14[%c0_38, %c0_39, %c0_40, %c0_41] : memref<1x3x16x256xf32, #tpu.memory_space<vmem>>, vector<1x1x16x256xf32>
    %48 = vector.shape_cast %47 : vector<1x1x16x256xf32> to vector<16x256xf32>
    %49 = vector.shape_cast %46 : vector<16x256xf32> to vector<1x1x16x256xf32>
    tpu.vector_store %arg14[%c0_38, %c0_39, %c0_40, %c0_41], %49 {strides = array<i32>} : memref<1x3x16x256xf32, #tpu.memory_space<vmem>>, vector<1x1x16x256xf32>,
    %cst_42 = arith.constant 0.000000e+00 : f32
    %50 = vector.broadcast %cst_42 : f32 to vector<18x256xf32>
    %c0_43 = arith.constant 0 : index
    %c0_44 = arith.constant 0 : index
    %51 = vector.load %arg16[%c0_43, %c0_44] : memref<18x256xf32, #tpu.memory_space<vmem>>, vector<18x256xf32>
    tpu.vector_store %arg16[%c0_43, %c0_44], %50 {strides = array<i32>} : memref<18x256xf32, #tpu.memory_space<vmem>>, vector<18x256xf32>,
    %c1_45 = arith.constant 1 : index
    %c0_46 = arith.constant 0 : index
    %52 = vector.load %arg16[%c1_45, %c0_46] : memref<18x256xf32, #tpu.memory_space<vmem>>, vector<16x256xf32>
    tpu.vector_store %arg16[%c1_45, %c0_46], %46 {strides = array<i32>} : memref<18x256xf32, #tpu.memory_space<vmem>>, vector<16x256xf32>,
    %cst_47 = arith.constant 0.000000e+00 : f32
    %53 = vector.broadcast %cst_47 : f32 to vector<16x256xf32>
    %c0_48 = arith.constant 0 : index
    %c0_49 = arith.constant 0 : index
    %54 = vector.load %arg16[%c0_48, %c0_49] : memref<18x256xf32, #tpu.memory_space<vmem>>, vector<16x256xf32>
    %55 = arith.truncf %54 : vector<16x256xf32> to vector<16x256xbf16>
    %c0_50 = arith.constant 0 : index
    %c0_51 = arith.constant 0 : index
    %c0_52 = arith.constant 0 : index
    %56 = vector.load %arg4[%c0_50, %c0_51, %c0_52] : memref<3x256x256xbf16, #tpu.memory_space<vmem>>, vector<1x256x256xbf16>
    %57 = vector.shape_cast %56 : vector<1x256x256xbf16> to vector<256x256xbf16>
    %cst_53 = arith.constant dense<0.000000e+00> : vector<16x256xf32>
    %58 = tpu.matmul %55, %57, %cst_53 {dimension_numbers = #tpu.dot_dimension_numbers<[1], [0], [0], [1], [0, 0, 1, 1], [], []>} : vector<16x256xbf16>, vector<256x256xbf16>, vector<16x256xf32> -> vector<16x256xf32>
    %59 = arith.addf %53, %58 : vector<16x256xf32>
    %c1_54 = arith.constant 1 : index
    %c0_55 = arith.constant 0 : index
    %60 = vector.load %arg16[%c1_54, %c0_55] : memref<18x256xf32, #tpu.memory_space<vmem>>, vector<16x256xf32>
    %61 = arith.truncf %60 : vector<16x256xf32> to vector<16x256xbf16>
    %c1_56 = arith.constant 1 : index
    %c0_57 = arith.constant 0 : index
    %c0_58 = arith.constant 0 : index
    %62 = vector.load %arg4[%c1_56, %c0_57, %c0_58] : memref<3x256x256xbf16, #tpu.memory_space<vmem>>, vector<1x256x256xbf16>
    %63 = vector.shape_cast %62 : vector<1x256x256xbf16> to vector<256x256xbf16>
    %cst_59 = arith.constant dense<0.000000e+00> : vector<16x256xf32>
    %64 = tpu.matmul %61, %63, %cst_59 {dimension_numbers = #tpu.dot_dimension_numbers<[1], [0], [0], [1], [0, 0, 1, 1], [], []>} : vector<16x256xbf16>, vector<256x256xbf16>, vector<16x256xf32> -> vector<16x256xf32>
    %65 = arith.addf %59, %64 : vector<16x256xf32>
    %c2_60 = arith.constant 2 : index
    %c0_61 = arith.constant 0 : index
    %66 = vector.load %arg16[%c2_60, %c0_61] : memref<18x256xf32, #tpu.memory_space<vmem>>, vector<16x256xf32>
    %67 = arith.truncf %66 : vector<16x256xf32> to vector<16x256xbf16>
    %c2_62 = arith.constant 2 : index
    %c0_63 = arith.constant 0 : index
    %c0_64 = arith.constant 0 : index
    %68 = vector.load %arg4[%c2_62, %c0_63, %c0_64] : memref<3x256x256xbf16, #tpu.memory_space<vmem>>, vector<1x256x256xbf16>
    %69 = vector.shape_cast %68 : vector<1x256x256xbf16> to vector<256x256xbf16>
    %cst_65 = arith.constant dense<0.000000e+00> : vector<16x256xf32>
    %70 = tpu.matmul %67, %69, %cst_65 {dimension_numbers = #tpu.dot_dimension_numbers<[1], [0], [0], [1], [0, 0, 1, 1], [], []>} : vector<16x256xbf16>, vector<256x256xbf16>, vector<16x256xf32> -> vector<16x256xf32>
    %71 = arith.addf %65, %70 : vector<16x256xf32>
    %c0_66 = arith.constant 0 : index
    %c0_67 = arith.constant 0 : index
    %72 = vector.load %arg5[%c0_66, %c0_67] : memref<1x256xf32, #tpu.memory_space<vmem>>, vector<1x256xf32>
    %73 = vector.broadcast %72 : vector<1x256xf32> to vector<16x256xf32>
    %74 = arith.addf %71, %73 : vector<16x256xf32>
    %cst_68 = arith.constant 0.000000e+00 : f32
    %75 = vector.broadcast %cst_68 : f32 to vector<16x256xf32>
    %76 = arith.cmpf ogt, %74, %75 : vector<16x256xf32>
    %cst_69 = arith.constant 0.000000e+00 : f32
    %77 = vector.broadcast %cst_69 : f32 to vector<16x256xf32>
    %78 = arith.minimumf %74, %77 : vector<16x256xf32>
    %79 = math.exp %78 : vector<16x256xf32>
    %cst_70 = arith.constant 1.000000e+00 : f32
    %80 = vector.broadcast %cst_70 : f32 to vector<16x256xf32>
    %81 = arith.subf %79, %80 : vector<16x256xf32>
    %82 = arith.select %76, %74, %81 : vector<16x256xi1>, vector<16x256xf32>
    %c0_71 = arith.constant 0 : index
    %c1_72 = arith.constant 1 : index
    %c0_73 = arith.constant 0 : index
    %c0_74 = arith.constant 0 : index
    %83 = vector.load %arg14[%c0_71, %c1_72, %c0_73, %c0_74] : memref<1x3x16x256xf32, #tpu.memory_space<vmem>>, vector<1x1x16x256xf32>
    %84 = vector.shape_cast %83 : vector<1x1x16x256xf32> to vector<16x256xf32>
    %85 = vector.shape_cast %82 : vector<16x256xf32> to vector<1x1x16x256xf32>
    tpu.vector_store %arg14[%c0_71, %c1_72, %c0_73, %c0_74], %85 {strides = array<i32>} : memref<1x3x16x256xf32, #tpu.memory_space<vmem>>, vector<1x1x16x256xf32>,
    %cst_75 = arith.constant 0.000000e+00 : f32
    %86 = vector.broadcast %cst_75 : f32 to vector<18x256xf32>
    %c0_76 = arith.constant 0 : index
    %c0_77 = arith.constant 0 : index
    %87 = vector.load %arg17[%c0_76, %c0_77] : memref<18x256xf32, #tpu.memory_space<vmem>>, vector<18x256xf32>
    tpu.vector_store %arg17[%c0_76, %c0_77], %86 {strides = array<i32>} : memref<18x256xf32, #tpu.memory_space<vmem>>, vector<18x256xf32>,
    %c1_78 = arith.constant 1 : index
    %c0_79 = arith.constant 0 : index
    %88 = vector.load %arg17[%c1_78, %c0_79] : memref<18x256xf32, #tpu.memory_space<vmem>>, vector<16x256xf32>
    tpu.vector_store %arg17[%c1_78, %c0_79], %82 {strides = array<i32>} : memref<18x256xf32, #tpu.memory_space<vmem>>, vector<16x256xf32>,
    %cst_80 = arith.constant 0.000000e+00 : f32
    %89 = vector.broadcast %cst_80 : f32 to vector<16x256xf32>
    %c0_81 = arith.constant 0 : index
    %c0_82 = arith.constant 0 : index
    %90 = vector.load %arg17[%c0_81, %c0_82] : memref<18x256xf32, #tpu.memory_space<vmem>>, vector<16x256xf32>
    %91 = arith.truncf %90 : vector<16x256xf32> to vector<16x256xbf16>
    %c0_83 = arith.constant 0 : index
    %c0_84 = arith.constant 0 : index
    %c0_85 = arith.constant 0 : index
    %92 = vector.load %arg6[%c0_83, %c0_84, %c0_85] : memref<3x256x256xbf16, #tpu.memory_space<vmem>>, vector<1x256x256xbf16>
    %93 = vector.shape_cast %92 : vector<1x256x256xbf16> to vector<256x256xbf16>
    %cst_86 = arith.constant dense<0.000000e+00> : vector<16x256xf32>
    %94 = tpu.matmul %91, %93, %cst_86 {dimension_numbers = #tpu.dot_dimension_numbers<[1], [0], [0], [1], [0, 0, 1, 1], [], []>} : vector<16x256xbf16>, vector<256x256xbf16>, vector<16x256xf32> -> vector<16x256xf32>
    %95 = arith.addf %89, %94 : vector<16x256xf32>
    %c1_87 = arith.constant 1 : index
    %c0_88 = arith.constant 0 : index
    %96 = vector.load %arg17[%c1_87, %c0_88] : memref<18x256xf32, #tpu.memory_space<vmem>>, vector<16x256xf32>
    %97 = arith.truncf %96 : vector<16x256xf32> to vector<16x256xbf16>
    %c1_89 = arith.constant 1 : index
    %c0_90 = arith.constant 0 : index
    %c0_91 = arith.constant 0 : index
    %98 = vector.load %arg6[%c1_89, %c0_90, %c0_91] : memref<3x256x256xbf16, #tpu.memory_space<vmem>>, vector<1x256x256xbf16>
    %99 = vector.shape_cast %98 : vector<1x256x256xbf16> to vector<256x256xbf16>
    %cst_92 = arith.constant dense<0.000000e+00> : vector<16x256xf32>
    %100 = tpu.matmul %97, %99, %cst_92 {dimension_numbers = #tpu.dot_dimension_numbers<[1], [0], [0], [1], [0, 0, 1, 1], [], []>} : vector<16x256xbf16>, vector<256x256xbf16>, vector<16x256xf32> -> vector<16x256xf32>
    %101 = arith.addf %95, %100 : vector<16x256xf32>
    %c2_93 = arith.constant 2 : index
    %c0_94 = arith.constant 0 : index
    %102 = vector.load %arg17[%c2_93, %c0_94] : memref<18x256xf32, #tpu.memory_space<vmem>>, vector<16x256xf32>
    %103 = arith.truncf %102 : vector<16x256xf32> to vector<16x256xbf16>
    %c2_95 = arith.constant 2 : index
    %c0_96 = arith.constant 0 : index
    %c0_97 = arith.constant 0 : index
    %104 = vector.load %arg6[%c2_95, %c0_96, %c0_97] : memref<3x256x256xbf16, #tpu.memory_space<vmem>>, vector<1x256x256xbf16>
    %105 = vector.shape_cast %104 : vector<1x256x256xbf16> to vector<256x256xbf16>
    %cst_98 = arith.constant dense<0.000000e+00> : vector<16x256xf32>
    %106 = tpu.matmul %103, %105, %cst_98 {dimension_numbers = #tpu.dot_dimension_numbers<[1], [0], [0], [1], [0, 0, 1, 1], [], []>} : vector<16x256xbf16>, vector<256x256xbf16>, vector<16x256xf32> -> vector<16x256xf32>
    %107 = arith.addf %101, %106 : vector<16x256xf32>
    %c0_99 = arith.constant 0 : index
    %c0_100 = arith.constant 0 : index
    %108 = vector.load %arg7[%c0_99, %c0_100] : memref<1x256xf32, #tpu.memory_space<vmem>>, vector<1x256xf32>
    %109 = vector.broadcast %108 : vector<1x256xf32> to vector<16x256xf32>
    %110 = arith.addf %107, %109 : vector<16x256xf32>
    %cst_101 = arith.constant 0.000000e+00 : f32
    %111 = vector.broadcast %cst_101 : f32 to vector<16x256xf32>
    %112 = arith.cmpf ogt, %110, %111 : vector<16x256xf32>
    %cst_102 = arith.constant 0.000000e+00 : f32
    %113 = vector.broadcast %cst_102 : f32 to vector<16x256xf32>
    %114 = arith.minimumf %110, %113 : vector<16x256xf32>
    %115 = math.exp %114 : vector<16x256xf32>
    %cst_103 = arith.constant 1.000000e+00 : f32
    %116 = vector.broadcast %cst_103 : f32 to vector<16x256xf32>
    %117 = arith.subf %115, %116 : vector<16x256xf32>
    %118 = arith.select %112, %110, %117 : vector<16x256xi1>, vector<16x256xf32>
    %cst_104 = arith.constant dense<0.000000e+00> : vector<256xf32>
    %119 = vector.multi_reduction <add>, %118, %cst_104 [0] : vector<16x256xf32> to vector<256xf32>
    %120 = vector.shape_cast %119 : vector<256xf32> to vector<1x256xf32>
    %cst_105 = arith.constant 1.600000e+01 : f32
    %121 = vector.broadcast %cst_105 : f32 to vector<1x256xf32>
    %122 = arith.divf %120, %121 : vector<1x256xf32>
    %c0_106 = arith.constant 0 : index
    %c0_107 = arith.constant 0 : index
    %123 = vector.load %arg12[%c0_106, %c0_107] : memref<256x16xf32, #tpu.memory_space<vmem>>, vector<256x16xf32>
    %cst_108 = arith.constant dense<0.000000e+00> : vector<1x16xf32>
    %124 = tpu.matmul %122, %123, %cst_108 {dimension_numbers = #tpu.dot_dimension_numbers<[1], [0], [0], [1], [0, 0, 1, 1], [], []>} : vector<1x256xf32>, vector<256x16xf32>, vector<1x16xf32> -> vector<1x16xf32>
    %cst_109 = arith.constant 6.250000e-02 : f32
    %125 = vector.broadcast %cst_109 : f32 to vector<1x16xf32>
    %126 = arith.mulf %124, %125 : vector<1x16xf32>
    %c0_110 = arith.constant 0 : index
    %c0_111 = arith.constant 0 : index
    %127 = vector.load %arg8[%c0_110, %c0_111] : memref<16x4xf32, #tpu.memory_space<vmem>>, vector<16x4xf32>
    %cst_112 = arith.constant dense<0.000000e+00> : vector<1x4xf32>
    %128 = tpu.matmul %126, %127, %cst_112 {dimension_numbers = #tpu.dot_dimension_numbers<[1], [0], [0], [1], [0, 0, 1, 1], [], []>} : vector<1x16xf32>, vector<16x4xf32>, vector<1x4xf32> -> vector<1x4xf32>
    %c0_113 = arith.constant 0 : index
    %c0_114 = arith.constant 0 : index
    %129 = vector.load %arg9[%c0_113, %c0_114] : memref<1x4xf32, #tpu.memory_space<vmem>>, vector<1x4xf32>
    %130 = arith.addf %128, %129 : vector<1x4xf32>
    %cst_115 = arith.constant 0.000000e+00 : f32
    %131 = vector.broadcast %cst_115 : f32 to vector<1x4xf32>
    %132 = arith.maximumf %130, %131 : vector<1x4xf32>
    %c0_116 = arith.constant 0 : index
    %c0_117 = arith.constant 0 : index
    %133 = vector.load %arg10[%c0_116, %c0_117] : memref<4x16xf32, #tpu.memory_space<vmem>>, vector<4x16xf32>
    %cst_118 = arith.constant dense<0.000000e+00> : vector<1x16xf32>
    %134 = tpu.matmul %132, %133, %cst_118 {dimension_numbers = #tpu.dot_dimension_numbers<[1], [0], [0], [1], [0, 0, 1, 1], [], []>} : vector<1x4xf32>, vector<4x16xf32>, vector<1x16xf32> -> vector<1x16xf32>
    %c0_119 = arith.constant 0 : index
    %c0_120 = arith.constant 0 : index
    %135 = vector.load %arg11[%c0_119, %c0_120] : memref<1x16xf32, #tpu.memory_space<vmem>>, vector<1x16xf32>
    %136 = arith.addf %134, %135 : vector<1x16xf32>
    %cst_121 = arith.constant 0.000000e+00 : f32
    %137 = vector.broadcast %cst_121 : f32 to vector<1x16xf32>
    %138 = arith.subf %137, %136 : vector<1x16xf32>
    %139 = math.exp %138 : vector<1x16xf32>
    %cst_122 = arith.constant 1.000000e+00 : f32
    %140 = vector.broadcast %cst_122 : f32 to vector<1x16xf32>
    %141 = arith.addf %140, %139 : vector<1x16xf32>
    %cst_123 = arith.constant 1.000000e+00 : f32
    %142 = vector.broadcast %cst_123 : f32 to vector<1x16xf32>
    %143 = arith.divf %142, %141 : vector<1x16xf32>
    %c0_124 = arith.constant 0 : index
    %c0_125 = arith.constant 0 : index
    %144 = vector.load %arg13[%c0_124, %c0_125] : memref<16x256xf32, #tpu.memory_space<vmem>>, vector<16x256xf32>
    %cst_126 = arith.constant dense<0.000000e+00> : vector<1x256xf32>
    %145 = tpu.matmul %143, %144, %cst_126 {dimension_numbers = #tpu.dot_dimension_numbers<[1], [0], [0], [1], [0, 0, 1, 1], [], []>} : vector<1x16xf32>, vector<16x256xf32>, vector<1x256xf32> -> vector<1x256xf32>
    %146 = vector.broadcast %145 : vector<1x256xf32> to vector<16x256xf32>
    %147 = arith.mulf %118, %146 : vector<16x256xf32>
    %c0_127 = arith.constant 0 : index
    %c2_128 = arith.constant 2 : index
    %c0_129 = arith.constant 0 : index
    %c0_130 = arith.constant 0 : index
    %148 = vector.load %arg14[%c0_127, %c2_128, %c0_129, %c0_130] : memref<1x3x16x256xf32, #tpu.memory_space<vmem>>, vector<1x1x16x256xf32>
    %149 = vector.shape_cast %148 : vector<1x1x16x256xf32> to vector<16x256xf32>
    %150 = vector.shape_cast %147 : vector<16x256xf32> to vector<1x1x16x256xf32>
    tpu.vector_store %arg14[%c0_127, %c2_128, %c0_129, %c0_130], %150 {strides = array<i32>} : memref<1x3x16x256xf32, #tpu.memory_space<vmem>>, vector<1x1x16x256xf32>,
    return
  }
  func.func @transform_0(%arg0: i32) -> (i32, i32, i32) {
    %c0_i32 = arith.constant 0 : i32
    %c0_i32_0 = arith.constant 0 : i32
    %c0_i32_1 = arith.constant 0 : i32
    return %arg0, %c0_i32, %c0_i32_0 : i32, i32, i32
  }
  func.func @transform_1(%arg0: i32) -> (i32, i32, i32) {
    %c0_i32 = arith.constant 0 : i32
    %c0_i32_0 = arith.constant 0 : i32
    %c0_i32_1 = arith.constant 0 : i32
    %c0_i32_2 = arith.constant 0 : i32
    return %c0_i32, %c0_i32_0, %c0_i32_1 : i32, i32, i32
  }
  func.func @transform_2(%arg0: i32) -> (i32, i32) {
    %c0_i32 = arith.constant 0 : i32
    %c0_i32_0 = arith.constant 0 : i32
    %c0_i32_1 = arith.constant 0 : i32
    return %c0_i32, %c0_i32_0 : i32, i32
  }
  func.func @transform_3(%arg0: i32) -> (i32, i32, i32) {
    %c0_i32 = arith.constant 0 : i32
    %c0_i32_0 = arith.constant 0 : i32
    %c0_i32_1 = arith.constant 0 : i32
    %c0_i32_2 = arith.constant 0 : i32
    return %c0_i32, %c0_i32_0, %c0_i32_1 : i32, i32, i32
  }
  func.func @transform_4(%arg0: i32) -> (i32, i32) {
    %c0_i32 = arith.constant 0 : i32
    %c0_i32_0 = arith.constant 0 : i32
    %c0_i32_1 = arith.constant 0 : i32
    return %c0_i32, %c0_i32_0 : i32, i32
  }
  func.func @transform_5(%arg0: i32) -> (i32, i32, i32) {
    %c0_i32 = arith.constant 0 : i32
    %c0_i32_0 = arith.constant 0 : i32
    %c0_i32_1 = arith.constant 0 : i32
    %c0_i32_2 = arith.constant 0 : i32
    return %c0_i32, %c0_i32_0, %c0_i32_1 : i32, i32, i32
  }
  func.func @transform_6(%arg0: i32) -> (i32, i32) {
    %c0_i32 = arith.constant 0 : i32
    %c0_i32_0 = arith.constant 0 : i32
    %c0_i32_1 = arith.constant 0 : i32
    return %c0_i32, %c0_i32_0 : i32, i32
  }
  func.func @transform_7(%arg0: i32) -> (i32, i32) {
    %c0_i32 = arith.constant 0 : i32
    %c0_i32_0 = arith.constant 0 : i32
    %c0_i32_1 = arith.constant 0 : i32
    return %c0_i32, %c0_i32_0 : i32, i32
  }
  func.func @transform_8(%arg0: i32) -> (i32, i32) {
    %c0_i32 = arith.constant 0 : i32
    %c0_i32_0 = arith.constant 0 : i32
    %c0_i32_1 = arith.constant 0 : i32
    return %c0_i32, %c0_i32_0 : i32, i32
  }
  func.func @transform_9(%arg0: i32) -> (i32, i32) {
    %c0_i32 = arith.constant 0 : i32
    %c0_i32_0 = arith.constant 0 : i32
    %c0_i32_1 = arith.constant 0 : i32
    return %c0_i32, %c0_i32_0 : i32, i32
  }
  func.func @transform_10(%arg0: i32) -> (i32, i32) {
    %c0_i32 = arith.constant 0 : i32
    %c0_i32_0 = arith.constant 0 : i32
    %c0_i32_1 = arith.constant 0 : i32
    return %c0_i32, %c0_i32_0 : i32, i32
  }
  func.func @transform_11(%arg0: i32) -> (i32, i32) {
    %c0_i32 = arith.constant 0 : i32
    %c0_i32_0 = arith.constant 0 : i32
    %c0_i32_1 = arith.constant 0 : i32
    return %c0_i32, %c0_i32_0 : i32, i32
  }
  func.func @transform_12(%arg0: i32) -> (i32, i32) {
    %c0_i32 = arith.constant 0 : i32
    %c0_i32_0 = arith.constant 0 : i32
    %c0_i32_1 = arith.constant 0 : i32
    return %c0_i32, %c0_i32_0 : i32, i32
  }
  func.func @transform_13(%arg0: i32) -> (i32, i32, i32, i32) {
    %c0_i32 = arith.constant 0 : i32
    %c0_i32_0 = arith.constant 0 : i32
    %c0_i32_1 = arith.constant 0 : i32
    %c0_i32_2 = arith.constant 0 : i32
    return %arg0, %c0_i32, %c0_i32_0, %c0_i32_1 : i32, i32, i32, i32
  }
}

</mosaic_0001>

<bundles_post_ra>
// kernel: se2d_core_forward.1
= control target key start
LH: loop header
LB: loop body
LE: loop exit
PB: predicated region body
PF: predicated region fallthrough
CT: control target
= control target key end

     0   :  { %18 = vsyncpa [#allocation6], 0  ;;  %s4617_s0 = inlined_call_operand.vmem [shape: f32[2,16,64], index: 0, kind: input, shape index: {}]   ;;  %s4618_s1 = inlined_call_operand.vmem [shape: bf16[5,64,256], index: 1, kind: input, shape index: {}]   ;;  %s4619_s2 = inlined_call_operand.vmem [shape: f32[1,256], index: 2, kind: input, shape index: {}]   ;;  %s4620_s3 = inlined_call_operand.hbm [shape: bf16[3,256,256], index: 3, kind: input, shape index: {}]   ;;  %s4621_s4 = inlined_call_operand.vmem [shape: f32[1,256], index: 4, kind: input, shape index: {}]   ;;  %s4622_s5 = inlined_call_operand.hbm [shape: bf16[3,256,256], index: 5, kind: input, shape index: {}]   ;;  %s4623_s6 = inlined_call_operand.vmem [shape: f32[1,256], index: 6, kind: input, shape index: {}]   ;;  %s4624_s7 = inlined_call_operand.vmem [shape: f32[16,4], index: 7, kind: input, shape index: {}]   ;;  %s4625_s8 = inlined_call_operand.vmem [shape: f32[1,4], index: 8, kind: input, shape index: {}]   ;;  %s4626_s9 = inlined_call_operand.vmem [shape: f32[4,16], index: 9, kind: input, shape index: {}]   ;;  %s4627_s10 = inlined_call_operand.vmem [shape: f32[1,16], index: 10, kind: input, shape index: {}]   ;;  %s4628_s11 = inlined_call_operand.vmem [shape: f32[256,16], index: 11, kind: input, shape index: {}]   ;;  %s4629_s12 = inlined_call_operand.vmem [shape: f32[16,256], index: 12, kind: input, shape index: {}]   ;;  %s4630_s13 = inlined_call_operand.vmem [shape: f32[2,3,16,256], index: 13, kind: output, shape index: {}]  }
   0x1   :  { %19 = vsyncpa [#allocation8], 0  ;;  %s4161_s25 = smov 0  }
   0x2 LB: > { %s4167_s26 = sadd.s32 4294967295, %s4081_s25   ;;  %p3170_p0 = scmp.ge.s32.totalorder %s4081_s25, 1  ;;  %s4081_s25 = sphi %s4161_s25, %s25_s25  }
   0x3   : > { %p334_p1 = scmp.lt.s32.totalorder %s4081_s25, 3  ;;  %s4083_s27 = smov [#allocation5]  }
   0x4   : > { %s352_s28 = sshll.u32 %s4083_s27, 4  ;;  %p4631_p3 = scmp.eq.s32.totalorder %s4167_s26, 0  ;;  %s353_s28 = int_to_ptr.vmem [resolvable:$true] %s352_s28 }
   0x5   : > { %p4171_p2 = pnand %p3170_p0, %p334_p1  ;;  %s4084_s30 = smov [#allocation7]  }
   0x6   : > { %s368_s14 = sshll.u32 %s4084_s30, 4  ;;  %s4011_s18 = scalar_lea.hbm %s4620_s3, 12288  ;;  %s4184_s14 = int_to_ptr.vmem [resolvable:$true] %s368_s14 }
   0x7   : > { %s4633_s29 = scalar_select %p4171_p2, 1, 0 }
   0x8   : > { %p3608_p4 = pneg %p4171_p2  ;;  %p4012_p6 = scmp.ne.s32.totalorder %s4620_s3, %s4011_s18 }
   0x9   : > { %p4018_p10 = scmp.lt.u32.totalorder %s4011_s18, %s4620_s3 }
   0xa   : > { %p4180_p5 = pnand %p4631_p3, %p3608_p4 }
   0xc   : > { %p4013_p7 = pneg %p4180_p5 }
   0xe   : > { %p4014_p8 = pnand %p4013_p7, %p4012_p6 }
  0x10   : > { %p4015_p9 = pneg %p4014_p8 }
  0x12   : > { %p4020_p11 = pnand %p4018_p10, %p4015_p9 }
  0x14   : > { %4023 = shalt.err (!%p4020_p11)
}
  0x15   : > { %s4024_s23 = scalar_lea.vmem %s353_s28, 12288  ;;  %p4032_p1 = scmp.lt.s32.totalorder %s353_s28, %s353_s28 }
  0x16   : > { %p4025_p12 = scmp.ne.s32.totalorder %s353_s28, %s4024_s23  ;;  %p4033_p4 = scmp.lt.s32.totalorder %s4024_s23, %s4024_s23 }
  0x18   : > { %p4027_p13 = pnand %p4025_p12, %p4013_p7  ;;  %p4034_p3 = por %p4033_p4, %p4032_p1 }
  0x1a   : > { %p4028_p0 = pneg %p4027_p13 }
  0x1c   : > { %p4035_p2 = pnand %p4034_p3, %p4028_p0 }
  0x1e   : > { %4038 = shalt.err (!%p4035_p2)
}
  0x1f   : > { %s4085_s24 = smov 128   ;;  %s4086_s27 = smov 8  }
  0x20   : > { %3611 = dma.hbm_to_vmem [thread:$0]  (!%p4180_p5), %s4620_s3, 12288, %s353_s28, [#allocation6], %s4085_s24, %s4085_s24, %s4086_s27  }
  0x21   : > { %s4039_s19 = scalar_lea.hbm %s4622_s5, 12288 }
  0x22   : > { %p4040_p6 = scmp.ne.s32.totalorder %s4622_s5, %s4039_s19  ;;  %p4046_p8 = scmp.lt.u32.totalorder %s4039_s19, %s4622_s5 }
  0x24   : > { %p4042_p2 = pnand %p4040_p6, %p4013_p7 }
  0x26   : > { %p4043_p3 = pneg %p4042_p2 }
  0x28   : > { %p4048_p9 = pnand %p4046_p8, %p4043_p3 }
  0x2a   : > { %4051 = shalt.err (!%p4048_p9)
}
  0x2b   : > { %s4052_s28 = scalar_lea.vmem %s4184_s14, 12288  ;;  %p4060_p13 = scmp.lt.s32.totalorder %s4184_s14, %s4184_s14 }
  0x2c   : > { %p4053_p10 = scmp.ne.s32.totalorder %s4184_s14, %s4052_s28  ;;  %p4061_p0 = scmp.lt.s32.totalorder %s4052_s28, %s4052_s28 }
  0x2e   : > { %p4055_p11 = pnand %p4053_p10, %p4013_p7  ;;  %p4062_p1 = por %p4061_p0, %p4060_p13 }
  0x30   : > { %p4056_p12 = pneg %p4055_p11 }
  0x32   : > { %p4063_p4 = pnand %p4062_p1, %p4056_p12 }
  0x34   : > { %4066 = shalt.err (!%p4063_p4)
}
  0x35   : > { %3614 = dma.hbm_to_vmem [thread:$0]  (!%p4180_p5), %s4622_s5, 12288, %s4184_s14, [#allocation8], %s4085_s24, %s4085_s24, %s4086_s27  }
  0x36   : > { %p4635_p6 = scmp.ne.s32.totalorder %s4633_s29, 0 }
  0x37   : > { %p4636_p2 = scmp.eq.s32.totalorder (!%p4635_p6), %s4167_s26, 0 }
  0x38   : > { %413 = sbr.rel (%p4635_p6) target bundleno = 2042 (0x7fa), region = 72 }
  0x3f   : > { %4072 = dma.done.wait (%p4636_p2), [#allocation6], 12288   ;;  %p4637_p7 = pmov %p4636_p2 }
  0x40   : > { %p4638_p3 = pmov %p4636_p2 }
  0x41   : > { %4074 = vsyncadd (%p4637_p7), [#allocation6], 4294955008 }
  0x42   : > { %4076 = dma.done.wait (%p4638_p3), [#allocation8], 12288   ;;  %p4639_p8 = pmov %p4636_p2 }
  0x43   : > { %p461_p9 = scmp.lt.s32.totalorder %s4167_s26, 1  ;;  %vm474_vm0 = vcmask 523264   ;;  %v4087_v0 = vmov 0   ;;  %v4088_v1 = vmov 0.0   ;;  %vm477_vm1 = vcmask 519168  }
  0x44   : > { %4078 = vsyncadd (%p4639_p8), [#allocation8], 4294955008  ;;  %665 = vmatprep.mubr.bf16.mxu0 %v4087_v0  ;;  %475 = vst.msk [vmem:[#allocation2] sm:$0xff] %vm474_vm0, %v4088_v1  ;;  %579 = vmatprep.mubr.bf16.mxu1 %v4087_v0  ;;  %v3635_v2 = vld [vmem:[%s4618_s1 + $0x4] ss:$8 sps:$4 sm:$0xff]   ;;  %vm1036_vm5 = vcmask 1040384  }
  0x45   : > { %476 = vst.msk [vmem:[#allocation2 + $0x8] sm:$0xff] %vm474_vm0, %v4088_v1  ;;  %1026 = vst [vmem:[#allocation3] sm:$0xff] %v4088_v1  ;;  %s4641_s26 = smov (!%p461_p9, %s4167_s26), 1  ;;  %v3637_v3 = vld [vmem:[%s4618_s1] ss:$8 sps:$4 sm:$0xff]   ;;  %633 = vmatprep.subr.bf16.mxu0 %v3635_v2  ;;  %vm1612_vm8 = vcmask 1046528  }
  0x46   : > { %1027 = vst [vmem:[#allocation3 + $0x8] sm:$0xff] %v4088_v1  ;;  %1030 = vst [vmem:[#allocation3 + $0x20] sm:$0x3] %v4088_v1  ;;  %s3475_s15 = sshll.u32 %s4641_s26, 4  ;;  %v3638_v4 = vld [vmem:[%s4618_s1 + $0x14] ss:$8 sps:$4 sm:$0xff]   ;;  %634 = vmatpush1.bf16.msra.mxu0 %v3637_v3 }
  0x47   : > { %1031 = vst [vmem:[#allocation3 + $0x28] sm:$0x3] %v4088_v1  ;;  %1873 = vst [vmem:[#allocation4] sm:$0xff] %v4088_v1  ;;  %v3640_v5 = vld [vmem:[%s4618_s1 + $0x10] ss:$8 sps:$4 sm:$0xff]   ;;  %s465_s23 = scalar_lea.vmem %s4617_s0, %s3475_s15  ;;  %635 = vmatprep.subr.bf16.mxu0 %v3638_v4 }
  0x48   : > { %1874 = vst [vmem:[#allocation4 + $0x8] sm:$0xff] %v4088_v1  ;;  %1877 = vst [vmem:[#allocation4 + $0x20] sm:$0x3] %v4088_v1  ;;  %v3641_v6 = vld [vmem:[%s4618_s1 + $0x24] ss:$8 sps:$4 sm:$0xff]  }
  0x49   : > { %1878 = vst [vmem:[#allocation4 + $0x28] sm:$0x3] %v4088_v1  ;;  %478 = vst.msk [vmem:[#allocation2 + $0x10] sm:$0xf] %vm477_vm1, %v4088_v1  ;;  %v3643_v7 = vld [vmem:[%s4618_s1 + $0x20] ss:$8 sps:$4 sm:$0xff]  }
  0x4a   : > { %v472_v8 = vld [vmem:[%s465_s23] sm:$0xff]  ;;  %636 = vmatpush1.bf16.msra.mxu0 %v3640_v5  ;;  %v473_v9 = vld [vmem:[%s465_s23 + $0x8] sm:$0xff]  ;;  %v3644_v10 = vld [vmem:[%s4618_s1 + $0x34] ss:$8 sps:$4 sm:$0xff]   ;;  %s3599_s23 = smul.u32 96, %s4641_s26  ;;  %vm4090_vm1 = vmmov 0  }
  0x4b   : > { %479 = vst.msk [vmem:[#allocation2 + $0x2] sm:$0xff] %vm474_vm0, %v472_v8  ;;  %637 = vmatprep.subr.bf16.mxu0 %v3641_v6  ;;  %480 = vst.msk [vmem:[#allocation2 + $0xa] sm:$0xff] %vm474_vm0, %v473_v9  ;;  %v3646_v11 = vld [vmem:[%s4618_s1 + $0x30] ss:$8 sps:$4 sm:$0xff]   ;;  %v3649_v12 = vld [vmem:[%s4618_s1 + $0x84] ss:$8 sps:$4 sm:$0xff]  }
  0x4c   : > { %v3647_v14 = vld [vmem:[%s4618_s1 + $0x80] ss:$8 sps:$4 sm:$0xff]   ;;  %v3652_v17 = vld [vmem:[%s4618_s1 + $0x94] ss:$8 sps:$4 sm:$0xff]   ;;  %v3650_v18 = vld [vmem:[%s4618_s1 + $0x90] ss:$8 sps:$4 sm:$0xff]   ;;  %s4411_s16 = scalar_lea.vmem %s4630_s13, %s3599_s23 }
  0x4d   : > { %v3671_v19 = vld [vmem:[%s4618_s1 + $0x44] ss:$8 sps:$4 sm:$0xff]   ;;  %v3673_v20 = vld [vmem:[%s4618_s1 + $0x40] ss:$8 sps:$4 sm:$0xff]   ;;  %v3677_v22 = vld [vmem:[%s4618_s1 + $0x54] ss:$8 sps:$4 sm:$0xff]  }
  0x4e   : > { %638 = vmatpush1.bf16.msra.mxu0 %v3643_v7  ;;  %v3655_v21 = vld [vmem:[%s4618_s1 + $0xa4] ss:$8 sps:$4 sm:$0xff]   ;;  %547 = vmatprep.subr.bf16.mxu1 %v3671_v19  ;;  %v3679_v23 = vld [vmem:[%s4618_s1 + $0x50] ss:$8 sps:$4 sm:$0xff]   ;;  %v3653_v24 = vld [vmem:[%s4618_s1 + $0xa0] ss:$8 sps:$4 sm:$0xff]  }
  0x4f   : > { %639 = vmatprep.subr.bf16.mxu0 %v3644_v10  ;;  %548 = vmatpush1.bf16.msra.mxu1 %v3673_v20  ;;  %v3658_v25 = vld [vmem:[%s4618_s1 + $0xb4] ss:$8 sps:$4 sm:$0xff]   ;;  %v3683_v26 = vld [vmem:[%s4618_s1 + $0x64] ss:$8 sps:$4 sm:$0xff]   ;;  %v3685_v27 = vld [vmem:[%s4618_s1 + $0x60] ss:$8 sps:$4 sm:$0xff]  }
  0x50   : > { %549 = vmatprep.subr.bf16.mxu1 %v3677_v22  ;;  %v3656_v28 = vld [vmem:[%s4618_s1 + $0xb0] ss:$8 sps:$4 sm:$0xff]   ;;  %v3689_v31 = vld [vmem:[%s4618_s1 + $0x74] ss:$8 sps:$4 sm:$0xff]   ;;  %v3661_v32 = vld [vmem:[%s4618_s1 + $0xc4] ss:$8 sps:$4 sm:$0xff]  }
  0x51   : > { %v3691_v33 = vld [vmem:[%s4618_s1 + $0x70] ss:$8 sps:$4 sm:$0xff]   ;;  %v3659_v37 = vld [vmem:[%s4618_s1 + $0xc0] ss:$8 sps:$4 sm:$0xff]   ;;  %v3697_v38 = vld [vmem:[#allocation5 + $0x104] ss:$8 sps:$4 sm:$0xff]  }
  0x52   : > { %v481_v13 = vld [vmem:[#allocation2] sm:$0xff]  ;;  %640 = vmatpush1.bf16.msra.mxu0 %v3646_v11  ;;  %v482_v15 = vld [vmem:[#allocation2 + $0x8] sm:$0xff]  ;;  %v3664_v39 = vld [vmem:[%s4618_s1 + $0xd4] ss:$8 sps:$4 sm:$0xff]   ;;  %vm1134_vm7 = vsmask.f32 7424 }
  0x53   : > { %731 = vmatprep.subr.bf16.mxu0 %v3649_v12  ;;  %v483_v16 = vpack.c.bf16 %v482_v15, %v481_v13  ;;  %550 = vmatpush1.bf16.msra.mxu1 %v3679_v23  ;;  %v676_v29 = vld [vmem:[#allocation2 + $0x2] sm:$0xff]  ;;  %v677_v30 = vld [vmem:[#allocation2 + $0xa] sm:$0xff]  ;;  %v3670_v48 = vld [vmem:[%s4618_s1 + $0xf4] ss:$8 sps:$4 sm:$0xff]  }
  0x54   : > { %551 = vmatprep.subr.bf16.mxu1 %v3683_v26  ;;  %v492_v34 = vld [vmem:[#allocation2 + $0x1] sm:$0xff]  ;;  %v493_v35 = vld [vmem:[#allocation2 + $0x9] sm:$0xff]  ;;  %v678_v36 = vpack.c.bf16 %v677_v30, %v676_v29  ;;  %v3682_v58 = vld [vmem:[%s4618_s1 + $0x114] ss:$8 sps:$4 sm:$0xff]  }
  0x55   : > { %3205 = vmatmul.mubr.msk.bf16.vlgmr.msra.gmra.mrb[0].mxu0 %vm474_vm0, %v483_v16  ;;  %v494_v40 = vpack.c.bf16 %v493_v35, %v492_v34  ;;  %v3695_v41 = vld [vmem:[#allocation5 + $0x100] ss:$8 sps:$4 sm:$0xff]   ;;  %v3700_v43 = vld [vmem:[#allocation5 + $0x114] ss:$8 sps:$4 sm:$0xff]   ;;  %v3698_v45 = vld [vmem:[#allocation5 + $0x110] ss:$8 sps:$4 sm:$0xff]  }
  0x56   : > { %732 = vmatpush1.bf16.msra.mxu0 %v3647_v14  ;;  %763 = vmatprep.mubr.bf16.mxu0 %v4087_v0  ;;  %v3662_v42 = vld [vmem:[%s4618_s1 + $0xd0] ss:$8 sps:$4 sm:$0xff]   ;;  %v3667_v44 = vld [vmem:[%s4618_s1 + $0xe4] ss:$8 sps:$4 sm:$0xff]   ;;  %v3665_v47 = vld [vmem:[%s4618_s1 + $0xe0] ss:$8 sps:$4 sm:$0xff]  }
  0x57   : > { %733 = vmatprep.subr.bf16.mxu0 %v3652_v17  ;;  %552 = vmatpush1.bf16.msra.mxu1 %v3685_v27  ;;  %v3703_v46 = vld [vmem:[#allocation5 + $0x124] ss:$8 sps:$4 sm:$0xff]   ;;  %v3701_v49 = vld [vmem:[#allocation5 + $0x120] ss:$8 sps:$4 sm:$0xff]   ;;  %v3706_v50 = vld [vmem:[#allocation5 + $0x134] ss:$8 sps:$4 sm:$0xff]  }
  0x58   : > { %553 = vmatprep.subr.bf16.mxu1 %v3689_v31  ;;  %v3668_v51 = vld [vmem:[%s4618_s1 + $0xf0] ss:$8 sps:$4 sm:$0xff]   ;;  %v778_v52 = vld [vmem:[#allocation2 + $0x3] sm:$0xff]  ;;  %v3694_v62 = vld [vmem:[%s4618_s1 + $0x134] ss:$8 sps:$4 sm:$0xff]  }
  0x59   : > { %v779_v53 = vld [vmem:[#allocation2 + $0xb] sm:$0xff]  ;;  %v3707_v4 = vld [vmem:[#allocation5 + $0x140] ss:$8 sps:$4 sm:$0xff]   ;;  %v3709_v5 = vld [vmem:[#allocation5 + $0x144] ss:$8 sps:$4 sm:$0xff]  }
  0x5a   : > { %734 = vmatpush1.bf16.msra.mxu0 %v3650_v18  ;;  %v3676_v54 = vld [vmem:[%s4618_s1 + $0x104] ss:$8 sps:$4 sm:$0xff]   ;;  %v3704_v55 = vld [vmem:[#allocation5 + $0x130] ss:$8 sps:$4 sm:$0xff]   ;;  %v780_v57 = vpack.c.bf16 %v779_v53, %v778_v52  ;;  %v3713_v9 = vld [vmem:[#allocation5 + $0x160] ss:$8 sps:$4 sm:$0xff]  }
  0x5b   : > { %735 = vmatprep.subr.bf16.mxu0 %v3655_v21  ;;  %554 = vmatpush1.bf16.msra.mxu1 %v3691_v33  ;;  %v3674_v56 = vld [vmem:[%s4618_s1 + $0x100] ss:$8 sps:$4 sm:$0xff]   ;;  %v3680_v59 = vld [vmem:[%s4618_s1 + $0x110] ss:$8 sps:$4 sm:$0xff]   ;;  %v3688_v60 = vld [vmem:[%s4618_s1 + $0x124] ss:$8 sps:$4 sm:$0xff]   ;;  %v984_v33 = vlaneseq }
  0x5c   : > { %1321 = vmatprep.subr.bf16.mxu1 %v3697_v38  ;;  %v3686_v61 = vld [vmem:[%s4618_s1 + $0x120] ss:$8 sps:$4 sm:$0xff]   ;;  %v3692_v63 = vld [vmem:[%s4618_s1 + $0x130] ss:$8 sps:$4 sm:$0xff]   ;;  %v3712_v6 = vld [vmem:[#allocation5 + $0x154] ss:$8 sps:$4 sm:$0xff]  }
  0x5d   : > { %v880_v2 = vld [vmem:[#allocation2 + $0x4] sm:$0xff]  ;;  %v881_v3 = vld [vmem:[#allocation2 + $0xc] sm:$0xff]  ;;  %v3719_v13 = vld [vmem:[#allocation5 + $0x180] ss:$8 sps:$4 sm:$0xff]   ;;  %v985_v34 = vshrl.u32 %v984_v33, 7 }
  0x5e   : > { %736 = vmatpush1.bf16.msra.mxu0 %v3653_v24  ;;  %3196 = vmatmul.mubr.msk.bf16.vlgmr.msra.gmra.mrb[0].mxu1 %vm474_vm0, %v494_v40  ;;  %v3710_v7 = vld [vmem:[#allocation5 + $0x150] ss:$8 sps:$4 sm:$0xff]   ;;  %v3715_v8 = vld [vmem:[#allocation5 + $0x164] ss:$8 sps:$4 sm:$0xff]   ;;  %v3718_v10 = vld [vmem:[#allocation5 + $0x174] ss:$8 sps:$4 sm:$0xff]  }
  0x5f   : > { %737 = vmatprep.subr.bf16.mxu0 %v3658_v25  ;;  %1322 = vmatpush1.bf16.msra.mxu1 %v3695_v41  ;;  %v3716_v11 = vld [vmem:[#allocation5 + $0x170] ss:$8 sps:$4 sm:$0xff]   ;;  %v3721_v12 = vld [vmem:[#allocation5 + $0x184] ss:$8 sps:$4 sm:$0xff]   ;;  %v3724_v14 = vld [vmem:[#allocation5 + $0x194] ss:$8 sps:$4 sm:$0xff]  }
  0x60   : > { %1323 = vmatprep.subr.bf16.mxu1 %v3700_v43  ;;  %v3722_v15 = vld [vmem:[#allocation5 + $0x190] ss:$8 sps:$4 sm:$0xff]   ;;  %v3727_v16 = vld [vmem:[#allocation5 + $0x1a4] ss:$8 sps:$4 sm:$0xff]   ;;  %v3725_v17 = vld [vmem:[#allocation5 + $0x1a0] ss:$8 sps:$4 sm:$0xff]  }
  0x61   : > { %v3730_v18 = vld [vmem:[#allocation5 + $0x1b4] ss:$8 sps:$4 sm:$0xff]   ;;  %v3728_v19 = vld [vmem:[#allocation5 + $0x1b0] ss:$8 sps:$4 sm:$0xff]   ;;  %v3733_v20 = vld [vmem:[#allocation5 + $0x1c4] ss:$8 sps:$4 sm:$0xff]  }
  0x62   : > { %738 = vmatpush1.bf16.msra.mxu0 %v3656_v28  ;;  %v3731_v21 = vld [vmem:[#allocation5 + $0x1c0] ss:$8 sps:$4 sm:$0xff]   ;;  %v3734_v22 = vld [vmem:[#allocation5 + $0x1d0] ss:$8 sps:$4 sm:$0xff]   ;;  %v3736_v23 = vld [vmem:[#allocation5 + $0x1d4] ss:$8 sps:$4 sm:$0xff]  }
  0x63   : > { %833 = vmatprep.subr.bf16.mxu0 %v3661_v32  ;;  %1324 = vmatpush1.bf16.msra.mxu1 %v3698_v45  ;;  %v3739_v24 = vld [vmem:[#allocation5 + $0x1e4] ss:$8 sps:$4 sm:$0xff]   ;;  %v3737_v25 = vld [vmem:[#allocation5 + $0x1e0] ss:$8 sps:$4 sm:$0xff]   ;;  %v3742_v26 = vld [vmem:[#allocation5 + $0x1f4] ss:$8 sps:$4 sm:$0xff]  }
  0x64   : > { %1325 = vmatprep.subr.bf16.mxu1 %v3703_v46  ;;  %v3740_v27 = vld [vmem:[#allocation5 + $0x1f0] ss:$8 sps:$4 sm:$0xff]   ;;  %v3745_v28 = vld [vmem:[#allocation5 + $0x4] ss:$8 sps:$4 sm:$0xff]   ;;  %v4398_v35 = vsub.s32 0, %v985_v34 }
  0x65   : > { %3222 = vmatmul.mubr.msk.bf16.vlgmr.msra.gmra.mrb[0].mxu0 %vm474_vm0, %v678_v36  ;;  %v982_v36 = vld [vmem:[%s4619_s2] sm:$0x3] }
  0x66   : > { %834 = vmatpush1.bf16.msra.mxu0 %v3659_v37  ;;  %865 = vmatprep.mubr.bf16.mxu0 %v4087_v0  ;;  %v4403_v37 = vsub.s32 1, %v985_v34  ;;  %v987_v38 = vrot.slane %v982_v36, %v4398_v35 }
  0x67   : > { %835 = vmatprep.subr.bf16.mxu0 %v3664_v39  ;;  %1326 = vmatpush1.bf16.msra.mxu1 %v3701_v49 }
  0x68   : > { %1327 = vmatprep.subr.bf16.mxu1 %v3706_v50  ;;  %v991_v40 = vrot.slane %v982_v36, %v4403_v37 }
  0x6a   : > { %836 = vmatpush1.bf16.msra.mxu0 %v3662_v42 }
  0x6b   : > { %837 = vmatprep.subr.bf16.mxu0 %v3667_v44  ;;  %1328 = vmatpush1.bf16.msra.mxu1 %v3704_v55 }
  0x6c   : > { %1329 = vmatprep.subr.bf16.mxu1 %v3709_v5 }
  0x6e   : > { %838 = vmatpush1.bf16.msra.mxu0 %v3665_v47 }
  0x6f   : > { %839 = vmatprep.subr.bf16.mxu0 %v3670_v48  ;;  %1330 = vmatpush1.bf16.msra.mxu1 %v3707_v4 }
  0x70   : > { %1331 = vmatprep.subr.bf16.mxu1 %v3712_v6 }
  0x72   : > { %840 = vmatpush1.bf16.msra.mxu0 %v3668_v51 }
  0x73   : > { %935 = vmatprep.subr.bf16.mxu0 %v3676_v54  ;;  %1332 = vmatpush1.bf16.msra.mxu1 %v3710_v7 }
  0x74   : > { %1333 = vmatprep.subr.bf16.mxu1 %v3715_v8 }
  0x75   : > { %3239 = vmatmul.mubr.msk.bf16.vlgmr.msra.gmra.mrb[0].mxu0 %vm474_vm0, %v780_v57 }
  0x76   : > { %936 = vmatpush1.bf16.msra.mxu0 %v3674_v56  ;;  %967 = vmatprep.mubr.bf16.mxu0 %v4087_v0  ;;  %v882_v0 = vpack.c.bf16 %v881_v3, %v880_v2 }
  0x77   : > { %937 = vmatprep.subr.bf16.mxu0 %v3682_v58  ;;  %1334 = vmatpush1.bf16.msra.mxu1 %v3713_v9 }
  0x78   : > { %1335 = vmatprep.subr.bf16.mxu1 %v3718_v10 }
  0x7a   : > { %938 = vmatpush1.bf16.msra.mxu0 %v3680_v59 }
  0x7b   : > { %939 = vmatprep.subr.bf16.mxu0 %v3688_v60  ;;  %1336 = vmatpush1.bf16.msra.mxu1 %v3716_v11 }
  0x7c   : > { %1337 = vmatprep.subr.bf16.mxu1 %v3721_v12 }
  0x7e   : > { %940 = vmatpush1.bf16.msra.mxu0 %v3686_v61 }
  0x7f   : > { %941 = vmatprep.subr.bf16.mxu0 %v3694_v62  ;;  %1338 = vmatpush1.bf16.msra.mxu1 %v3719_v13 }
  0x80   : > { %1339 = vmatprep.subr.bf16.mxu1 %v3724_v14 }
  0x82   : > { %942 = vmatpush1.bf16.msra.mxu0 %v3692_v63 }
  0x83   : > { %1340 = vmatpush1.bf16.msra.mxu1 %v3722_v15 }
  0x84   : > { %1341 = vmatprep.subr.bf16.mxu1 %v3727_v16 }
  0x85   : > { %3256 = vmatmul.mubr.msk.bf16.vlgmr.msra.gmra.mrb[0].mxu0 %vm474_vm0, %v882_v0 }
  0x87   : > { %1342 = vmatpush1.bf16.msra.mxu1 %v3725_v17 }
  0x88   : > { %1343 = vmatprep.subr.bf16.mxu1 %v3730_v18 }
  0x8b   : > { %1344 = vmatpush1.bf16.msra.mxu1 %v3728_v19 }
  0x8c   : > { %1345 = vmatprep.subr.bf16.mxu1 %v3733_v20 }
  0x8f   : > { %1346 = vmatpush1.bf16.msra.mxu1 %v3731_v21 }
  0x90   : > { %1347 = vmatprep.subr.bf16.mxu1 %v3736_v23 }
  0x93   : > { %1348 = vmatpush1.bf16.msra.mxu1 %v3734_v22 }
  0x94   : > { %1349 = vmatprep.subr.bf16.mxu1 %v3739_v24 }
  0x97   : > { %1350 = vmatpush1.bf16.msra.mxu1 %v3737_v25 }
  0x98   : > { %1351 = vmatprep.subr.bf16.mxu1 %v3742_v26 }
  0x9b   : > { %1352 = vmatpush1.bf16.msra.mxu1 %v3740_v27 }
  0x9c   : > { %1524 = vmatprep.subr.bf16.mxu1 %v3745_v28 }
 0x131   : > { %v581_v29 = vpop.f32.mrb[0].mxu1 }
 0x132   : > { %v583_v30 = vpop.f32.mrb[1].mxu1 }
 0x133   : > { %v585_v31 = vpop.f32.mrb[2].mxu1 }
 0x134   : > { %v587_v32 = vpop.f32.mrb[3].mxu1 }
 0x158   : > { %v969_v39 = vpop.f32.mrb[0].mxu0 }
 0x159   : > { %v3567_v41 = vadd.f32 %v969_v39, %v581_v29  ;;  %v971_v42 = vpop.f32.mrb[1].mxu0 }
 0x15a   : > { %v3568_v43 = vadd.f32 %v971_v42, %v583_v30  ;;  %v973_v44 = vpop.f32.mrb[2].mxu0 }
 0x15b   : > { %v994_v45 = vadd.f32 %v3567_v41, %v987_v38  ;;  %v3569_v46 = vadd.f32 %v973_v44, %v585_v31  ;;  %v975_v47 = vpop.f32.mrb[3].mxu0  ;;  %v3841_v44 = vld [vmem:[#allocation7 + $0x104] ss:$8 sps:$4 sm:$0xff]  }
 0x15c   : > { %v995_v48 = vadd.f32 %v3568_v43, %v991_v40  ;;  %v3570_v49 = vadd.f32 %v975_v47, %v587_v32  ;;  %v3839_v43 = vld [vmem:[#allocation7 + $0x100] ss:$8 sps:$4 sm:$0xff]   ;;  %v3751_v47 = vld [vmem:[#allocation5 + $0x24] ss:$8 sps:$4 sm:$0xff]   ;;  %2166 = vmatprep.subr.bf16.mxu0 %v3841_v44 }
 0x15d   : > { %v1002_v50 = vmin.f32 %v994_v45, 0.0  ;;  %v996_v51 = vadd.f32 %v3569_v46, %v987_v38  ;;  %vm998_vm2 = vcmp.gt.f32.partialorder %v994_v45, 0.0  ;;  %v3743_v38 = vld [vmem:[#allocation5] ss:$8 sps:$4 sm:$0xff]   ;;  %v3844_v46 = vld [vmem:[#allocation7 + $0x114] ss:$8 sps:$4 sm:$0xff]   ;;  %2167 = vmatpush1.bf16.msra.mxu0 %v3839_v43 }
 0x15e   : > { %v1003_v52 = vmin.f32 %v995_v48, 0.0  ;;  %v997_v53 = vadd.f32 %v3570_v49, %v991_v40  ;;  %vm999_vm3 = vcmp.gt.f32.partialorder %v995_v48, 0.0  ;;  %v3748_v40 = vld [vmem:[#allocation5 + $0x14] ss:$8 sps:$4 sm:$0xff]   ;;  %2168 = vmatprep.subr.bf16.mxu0 %v3844_v46  ;;  %v3847_v49 = vld [vmem:[#allocation7 + $0x124] ss:$8 sps:$4 sm:$0xff]  }
 0x15f   : > { %v1006_v54 = vmul.f32 1.442695, %v1002_v50  ;;  %v1004_v55 = vmin.f32 %v996_v51, 0.0  ;;  %vm1000_vm4 = vcmp.gt.f32.partialorder %v996_v51, 0.0  ;;  %v3749_v50 = vld [vmem:[#allocation5 + $0x20] ss:$8 sps:$4 sm:$0xff]  }
 0x160   : > { %v1008_v56 = vmul.f32 1.442695, %v1003_v52  ;;  %v1005_v57 = vmin.f32 %v997_v53, 0.0  ;;  %vm1001_vm6 = vcmp.gt.f32.partialorder %v997_v53, 0.0  ;;  %v3845_v52 = vld [vmem:[#allocation7 + $0x120] ss:$8 sps:$4 sm:$0xff]  }
 0x161   : > { %3983 = vpow2.f32 %v1006_v54  ;;  %v1010_v58 = vmul.f32 1.442695, %v1004_v55  ;;  %v3752_v54 = vld [vmem:[#allocation5 + $0x30] ss:$8 sps:$4 sm:$0xff]   ;;  %v3757_v55 = vld [vmem:[#allocation5 + $0x44] ss:$8 sps:$4 sm:$0xff]  }
 0x162   : > { %3985 = vpow2.f32 %v1008_v56  ;;  %v1012_v59 = vmul.f32 1.442695, %v1005_v57  ;;  %v3848_v56 = vld [vmem:[#allocation7 + $0x130] ss:$8 sps:$4 sm:$0xff]   ;;  %v3853_v57 = vld [vmem:[#allocation7 + $0x144] ss:$8 sps:$4 sm:$0xff]  }
 0x163   : > { %3987 = vpow2.f32 %v1010_v58  ;;  %v3755_v58 = vld [vmem:[#allocation5 + $0x40] ss:$8 sps:$4 sm:$0xff]   ;;  %v3811_v43 = vld [vmem:[#allocation5 + $0x264] ss:$8 sps:$4 sm:$0xff]   ;;  %v3812_v46 = vld [vmem:[#allocation5 + $0x270] ss:$8 sps:$4 sm:$0xff]  }
 0x164   : > { %3989 = vpow2.f32 %v1012_v59  ;;  %v3760_v59 = vld [vmem:[#allocation5 + $0x54] ss:$8 sps:$4 sm:$0xff]   ;;  %v3809_v44 = vld [vmem:[#allocation5 + $0x260] ss:$8 sps:$4 sm:$0xff]  }
 0x16b   : > { %v3984_v60 = vpop.eup %3983 }
 0x16c   : > { %v3986_v61 = vpop.eup %3985  ;;  %v3257_v62 = vadd.f32 -1.0, %v3984_v60  ;;  %v3851_v60 = vld [vmem:[#allocation7 + $0x140] ss:$8 sps:$4 sm:$0xff]  }
 0x16d   : > { %v3988_v63 = vpop.eup %3987  ;;  %v3258_v2 = vadd.f32 -1.0, %v3986_v61  ;;  %v3758_v61 = vld [vmem:[#allocation5 + $0x50] ss:$8 sps:$4 sm:$0xff]  }
 0x16e   : > { %v3990_v3 = vpop.eup %3989  ;;  %v1018_v0 = vsel %vm998_vm2, %v994_v45, %v3257_v62  ;;  %v3259_v4 = vadd.f32 -1.0, %v3988_v63  ;;  %v3746_v45 = vld [vmem:[#allocation5 + $0x10] ss:$8 sps:$4 sm:$0xff]   ;;  %v3763_v62 = vld [vmem:[#allocation5 + $0x64] ss:$8 sps:$4 sm:$0xff]   ;;  %vm2835_vm2 = vcmask 130048  }
 0x16f   : > { %1022 = vst [vmem:[%s4411_s16] sm:$0xff] %v1018_v0  ;;  %v1037_v5 = vrot.slane %v1018_v0, 7  ;;  %v1019_v6 = vsel %vm999_vm3, %v995_v48, %v3258_v2  ;;  %v3260_v7 = vadd.f32 -1.0, %v3990_v3  ;;  %v3842_v48 = vld [vmem:[#allocation7 + $0x110] ss:$8 sps:$4 sm:$0xff]   ;;  %v3761_v63 = vld [vmem:[#allocation5 + $0x60] ss:$8 sps:$4 sm:$0xff]  }
 0x170   : > { %1023 = vst [vmem:[%s4411_s16 + $0x8] sm:$0xff] %v1019_v6  ;;  %v1038_v8 = vrot.slane %v1019_v6, 7  ;;  %v1020_v9 = vsel %vm1000_vm4, %v996_v51, %v3259_v4  ;;  %v3754_v51 = vld [vmem:[#allocation5 + $0x34] ss:$8 sps:$4 sm:$0xff]   ;;  %2169 = vmatpush1.bf16.msra.mxu0 %v3842_v48  ;;  %v3764_v3 = vld [vmem:[#allocation5 + $0x70] ss:$8 sps:$4 sm:$0xff]  }
 0x171   : > { %1049 = vst [vmem:[#allocation3] sm:$0xfe] %v1037_v5  ;;  %1024 = vst [vmem:[%s4411_s16 + $0x10] sm:$0xff] %v1020_v9  ;;  %v1039_v10 = vrot.slane %v1020_v9, 7  ;;  %v1021_v11 = vsel %vm1001_vm6, %v997_v53, %v3260_v7  ;;  %2170 = vmatprep.subr.bf16.mxu0 %v3847_v49  ;;  %v3850_v53 = vld [vmem:[#allocation7 + $0x134] ss:$8 sps:$4 sm:$0xff]  }
 0x172   : > { %1050 = vst [vmem:[#allocation3 + $0x8] sm:$0xfe] %v1038_v8  ;;  %1025 = vst [vmem:[%s4411_s16 + $0x18] sm:$0xff] %v1021_v11  ;;  %v1041_v12 = vrot.slane %v1021_v11, 7  ;;  %v3766_v2 = vld [vmem:[#allocation5 + $0x74] ss:$8 sps:$4 sm:$0xff]  }
 0x173   : > { %v4418_v13 = vsel %vm1036_vm5, %v1037_v5, %v1039_v10  ;;  %1053 = vst [vmem:[#allocation3 + $0x20] sm:$0x1] %v1039_v10  ;;  %v3769_v0 = vld [vmem:[#allocation5 + $0x84] ss:$8 sps:$4 sm:$0xff]   ;;  %v3767_v4 = vld [vmem:[#allocation5 + $0x80] ss:$8 sps:$4 sm:$0xff]  }
 0x174   : > { %v4421_v14 = vsel %vm1036_vm5, %v1038_v8, %v1041_v12  ;;  %1054 = vst [vmem:[#allocation3 + $0x28] sm:$0x1] %v1041_v12  ;;  %2171 = vmatpush1.bf16.msra.mxu0 %v3845_v52  ;;  %v3772_v5 = vld [vmem:[#allocation5 + $0x94] ss:$8 sps:$4 sm:$0xff]   ;;  %v3770_v6 = vld [vmem:[#allocation5 + $0x90] ss:$8 sps:$4 sm:$0xff]  }
 0x175   : > { %2172 = vmatprep.subr.bf16.mxu0 %v3850_v53  ;;  %v3775_v7 = vld [vmem:[#allocation5 + $0xa4] ss:$8 sps:$4 sm:$0xff]   ;;  %v3773_v8 = vld [vmem:[#allocation5 + $0xa0] ss:$8 sps:$4 sm:$0xff]   ;;  %v3778_v9 = vld [vmem:[#allocation5 + $0xb4] ss:$8 sps:$4 sm:$0xff]  }
 0x176   : > { %v3776_v10 = vld [vmem:[#allocation5 + $0xb0] ss:$8 sps:$4 sm:$0xff]   ;;  %v3781_v11 = vld [vmem:[#allocation5 + $0xc4] ss:$8 sps:$4 sm:$0xff]   ;;  %v3779_v12 = vld [vmem:[#allocation5 + $0xc0] ss:$8 sps:$4 sm:$0xff]  }
 0x177   : > { %v3815_v48 = vld [vmem:[#allocation5 + $0x280] ss:$8 sps:$4 sm:$0xff]   ;;  %v3820_v49 = vld [vmem:[#allocation5 + $0x294] ss:$8 sps:$4 sm:$0xff]   ;;  %vm2916_vm3 = vcmask 1043456   ;;  %vm2912_vm4 = vcmask 31744  }
 0x178   : > { %v1093_v15 = vld [vmem:[#allocation3] sm:$0xfe]  ;;  %2173 = vmatpush1.bf16.msra.mxu0 %v3848_v56  ;;  %v3826_v53 = vld [vmem:[#allocation5 + $0x2b4] ss:$8 sps:$4 sm:$0xff]  }
 0x179   : > { %v1094_v16 = vld [vmem:[#allocation3 + $0x8] sm:$0xfe]  ;;  %v1097_v17 = vpack.c.bf16 %v4418_v13, %v1093_v15  ;;  %2174 = vmatprep.subr.bf16.mxu0 %v3853_v57  ;;  %v3784_v15 = vld [vmem:[#allocation5 + $0xd4] ss:$8 sps:$4 sm:$0xff]  }
 0x17a   : > { %v1098_v18 = vpack.c.bf16 %v4421_v14, %v1094_v16  ;;  %v1095_v19 = vld [vmem:[#allocation3 + $0x20] sm:$0x1]  ;;  %v1056_v36 = vld [vmem:[#allocation3 + $0x8] sm:$0xff]  ;;  %v3782_v16 = vld [vmem:[#allocation5 + $0xd0] ss:$8 sps:$4 sm:$0xff]  }
 0x17b   : > { %v1096_v20 = vld [vmem:[#allocation3 + $0x28] sm:$0x1]  ;;  %v1099_v21 = vpack.c.bf16 %v1095_v19, %v1095_v19  ;;  %v1138_v22 = vshll.u32 %v1097_v17, 16  ;;  %v1136_v25 = vshrl.u32 %v1097_v17, 16  ;;  %v1060_v42 = vpack.c.bf16 %v4421_v14, %v1056_v36  ;;  %v3787_v17 = vld [vmem:[#allocation5 + $0xe4] ss:$8 sps:$4 sm:$0xff]  }
 0x17c   : > { %v1100_v23 = vpack.c.bf16 %v1096_v20, %v1096_v20  ;;  %v1150_v24 = vshll.u32 %v1098_v18, 16  ;;  %v1148_v28 = vshrl.u32 %v1098_v18, 16  ;;  %2175 = vmatpush1.bf16.msra.mxu0 %v3851_v60  ;;  %v3785_v18 = vld [vmem:[#allocation5 + $0xe0] ss:$8 sps:$4 sm:$0xff]   ;;  %v3790_v20 = vld [vmem:[#allocation5 + $0xf4] ss:$8 sps:$4 sm:$0xff]  }
 0x17d   : > { %v1140_v26 = vrot.slane %v1138_v22, 1  ;;  %v1143_v27 = vshll.u32 %v1099_v21, 16  ;;  %v1570_v19 = vld [vmem:[#allocation3 + $0x28] sm:$0x3]  ;;  %v1568_v21 = vld [vmem:[#allocation3 + $0x8] sm:$0xfc] }
 0x17e   : > { %v1152_v29 = vrot.slane %v1150_v24, 1  ;;  %v1155_v30 = vshll.u32 %v1100_v23, 16  ;;  %v1574_v22 = vpack.c.bf16 %v1570_v19, %v1570_v19  ;;  %v3788_v23 = vld [vmem:[#allocation5 + $0xf0] ss:$8 sps:$4 sm:$0xff]   ;;  %v3793_v24 = vld [vmem:[#allocation5 + $0x204] ss:$8 sps:$4 sm:$0xff]  }
 0x17f   : > { %v1141_v31 = vor.u32 %v1140_v26, %v1136_v25  ;;  %v1145_v32 = vrot.slane %v1143_v27, 1  ;;  %v1572_v25 = vpack.c.bf16 %v4421_v14, %v1568_v21  ;;  %v1055_v26 = vld [vmem:[#allocation3] sm:$0xff]  ;;  %v3802_v36 = vld [vmem:[#allocation5 + $0x234] ss:$8 sps:$4 sm:$0xff]   ;;  %v3872_v21 = vld [vmem:[#allocation7 + $0x1b0] ss:$8 sps:$4 sm:$0xff]  }
 0x180   : > { %v1153_v33 = vor.u32 %v1152_v29, %v1148_v28  ;;  %v1157_v34 = vrot.slane %v1155_v30, 1  ;;  %v1617_v27 = vrot.slane %v1574_v22, 1  ;;  %v3791_v28 = vld [vmem:[#allocation5 + $0x200] ss:$8 sps:$4 sm:$0xff]   ;;  %v1059_v29 = vpack.c.bf16 %v4418_v13, %v1055_v26  ;;  %v3832_v57 = vld [vmem:[#allocation5 + $0x2d4] ss:$8 sps:$4 sm:$0xff]  }
 0x181   : > { %v1146_v41 = vsel %vm1134_vm7, %v1141_v31, %v1145_v32  ;;  %v1616_v30 = vrot.slane %v1572_v25, 1  ;;  %v3796_v31 = vld [vmem:[#allocation5 + $0x214] ss:$8 sps:$4 sm:$0xff]   ;;  %v3797_v14 = vld [vmem:[#allocation5 + $0x220] ss:$8 sps:$4 sm:$0xff]  }
 0x182   : > { %v1158_v39 = vsel %vm1134_vm7, %v1153_v33, %v1157_v34  ;;  %v3794_v33 = vld [vmem:[#allocation5 + $0x210] ss:$8 sps:$4 sm:$0xff]   ;;  %v3799_v34 = vld [vmem:[#allocation5 + $0x224] ss:$8 sps:$4 sm:$0xff]   ;;  %v3821_v52 = vld [vmem:[#allocation5 + $0x2a0] ss:$8 sps:$4 sm:$0xff]  }
 0x183   : > { %1353 = vmatprep.mubr.bf16.mxu1 %v1158_v39  ;;  %v1618_v32 = vsel %vm1612_vm8, %v1616_v30, %v1617_v27  ;;  %v3805_v39 = vld [vmem:[#allocation5 + $0x244] ss:$8 sps:$4 sm:$0xff]   ;;  %v3827_v56 = vld [vmem:[#allocation5 + $0x2c0] ss:$8 sps:$4 sm:$0xff]   ;;  %v3878_v25 = vld [vmem:[#allocation7 + $0x1d0] ss:$8 sps:$4 sm:$0xff]  }
 0x184   : > { %1354 = vmatmul.mubr.bf16.vlgmr.msra.gmra.mrb[4].mxu1 %v1146_v41  ;;  %v3808_v41 = vld [vmem:[#allocation5 + $0x254] ss:$8 sps:$4 sm:$0xff]   ;;  %v1569_v60 = vld [vmem:[#allocation3 + $0x20] sm:$0x3]  ;;  %v3877_v22 = vld [vmem:[#allocation7 + $0x1c4] ss:$8 sps:$4 sm:$0xff]  }
 0x185   : > { %1525 = vmatpush1.bf16.msra.mxu1 %v3743_v38  ;;  %1556 = vmatprep.mubr.bf16.mxu1 %v1060_v42  ;;  %v3800_v38 = vld [vmem:[#allocation5 + $0x230] ss:$8 sps:$4 sm:$0xff]   ;;  %v3869_v19 = vld [vmem:[#allocation7 + $0x1a0] ss:$8 sps:$4 sm:$0xff]   ;;  %v3883_v26 = vld [vmem:[#allocation7 + $0x1e4] ss:$8 sps:$4 sm:$0xff]  }
 0x186   : > { %1526 = vmatprep.subr.bf16.mxu1 %v3748_v40  ;;  %v3803_v40 = vld [vmem:[#allocation5 + $0x240] ss:$8 sps:$4 sm:$0xff]   ;;  %v3806_v42 = vld [vmem:[#allocation5 + $0x250] ss:$8 sps:$4 sm:$0xff]   ;;  %v3889_v30 = vld [vmem:[#allocation7 + $0x4] ss:$8 sps:$4 sm:$0xff]  }
 0x187   : > { %v3881_v27 = vld [vmem:[#allocation7 + $0x1e0] ss:$8 sps:$4 sm:$0xff]  }
 0x189   : > { %1527 = vmatpush1.bf16.msra.mxu1 %v3746_v45  ;;  %v3814_v45 = vld [vmem:[#allocation5 + $0x274] ss:$8 sps:$4 sm:$0xff]  }
 0x18a   : > { %1528 = vmatprep.subr.bf16.mxu1 %v3751_v47  ;;  %v3817_v47 = vld [vmem:[#allocation5 + $0x284] ss:$8 sps:$4 sm:$0xff]  }
 0x18d   : > { %1529 = vmatpush1.bf16.msra.mxu1 %v3749_v50  ;;  %v3818_v50 = vld [vmem:[#allocation5 + $0x290] ss:$8 sps:$4 sm:$0xff]  }
 0x18e   : > { %1530 = vmatprep.subr.bf16.mxu1 %v3754_v51  ;;  %v3823_v51 = vld [vmem:[#allocation5 + $0x2a4] ss:$8 sps:$4 sm:$0xff]  }
 0x191   : > { %1531 = vmatpush1.bf16.msra.mxu1 %v3752_v54  ;;  %v3824_v54 = vld [vmem:[#allocation5 + $0x2b0] ss:$8 sps:$4 sm:$0xff]  }
 0x192   : > { %1532 = vmatprep.subr.bf16.mxu1 %v3757_v55  ;;  %v3829_v55 = vld [vmem:[#allocation5 + $0x2c4] ss:$8 sps:$4 sm:$0xff]  }
 0x195   : > { %1533 = vmatpush1.bf16.msra.mxu1 %v3755_v58  ;;  %v3830_v58 = vld [vmem:[#allocation5 + $0x2d0] ss:$8 sps:$4 sm:$0xff]  }
 0x196   : > { %1534 = vmatprep.subr.bf16.mxu1 %v3760_v59  ;;  %v3835_v59 = vld [vmem:[#allocation5 + $0x2e4] ss:$8 sps:$4 sm:$0xff]  }
 0x199   : > { %1535 = vmatpush1.bf16.msra.mxu1 %v3758_v61  ;;  %v3833_v61 = vld [vmem:[#allocation5 + $0x2e0] ss:$8 sps:$4 sm:$0xff]  }
 0x19a   : > { %1536 = vmatprep.subr.bf16.mxu1 %v3763_v62  ;;  %v3838_v62 = vld [vmem:[#allocation5 + $0x2f4] ss:$8 sps:$4 sm:$0xff]  }
 0x19d   : > { %1537 = vmatpush1.bf16.msra.mxu1 %v3761_v63  ;;  %v1567_v63 = vld [vmem:[#allocation3] sm:$0xfc] }
 0x19e   : > { %1538 = vmatprep.subr.bf16.mxu1 %v3766_v2  ;;  %v1573_v2 = vpack.c.bf16 %v1569_v60, %v1569_v60 }
 0x1a1   : > { %1539 = vmatpush1.bf16.msra.mxu1 %v3764_v3  ;;  %v3836_v3 = vld [vmem:[#allocation5 + $0x2f0] ss:$8 sps:$4 sm:$0xff]  }
 0x1a2   : > { %1540 = vmatprep.subr.bf16.mxu1 %v3769_v0  ;;  %v1571_v0 = vpack.c.bf16 %v4418_v13, %v1567_v63  ;;  %v3865_v13 = vld [vmem:[#allocation7 + $0x184] ss:$8 sps:$4 sm:$0xff]  }
 0x1a5   : > { %1541 = vmatpush1.bf16.msra.mxu1 %v3767_v4  ;;  %v1614_v4 = vrot.slane %v1573_v2, 1 }
 0x1a6   : > { %1542 = vmatprep.subr.bf16.mxu1 %v3772_v5  ;;  %v1613_v5 = vrot.slane %v1571_v0, 1 }
 0x1a9   : > { %1543 = vmatpush1.bf16.msra.mxu1 %v3770_v6  ;;  %v1615_v6 = vsel %vm1612_vm8, %v1613_v5, %v1614_v4 }
 0x1aa   : > { %1544 = vmatprep.subr.bf16.mxu1 %v3775_v7  ;;  %v3856_v7 = vld [vmem:[#allocation7 + $0x154] ss:$8 sps:$4 sm:$0xff]  }
 0x1ab   : > { %2176 = vmatprep.subr.bf16.mxu0 %v3856_v7 }
 0x1ad   : > { %1545 = vmatpush1.bf16.msra.mxu1 %v3773_v8  ;;  %v3854_v8 = vld [vmem:[#allocation7 + $0x150] ss:$8 sps:$4 sm:$0xff]  }
 0x1ae   : > { %1546 = vmatprep.subr.bf16.mxu1 %v3778_v9  ;;  %2177 = vmatpush1.bf16.msra.mxu0 %v3854_v8  ;;  %v3859_v9 = vld [vmem:[#allocation7 + $0x164] ss:$8 sps:$4 sm:$0xff]  }
 0x1af   : > { %2178 = vmatprep.subr.bf16.mxu0 %v3859_v9 }
 0x1b1   : > { %1547 = vmatpush1.bf16.msra.mxu1 %v3776_v10  ;;  %v3857_v10 = vld [vmem:[#allocation7 + $0x160] ss:$8 sps:$4 sm:$0xff]  }
 0x1b2   : > { %1548 = vmatprep.subr.bf16.mxu1 %v3781_v11  ;;  %2179 = vmatpush1.bf16.msra.mxu0 %v3857_v10  ;;  %v3862_v11 = vld [vmem:[#allocation7 + $0x174] ss:$8 sps:$4 sm:$0xff]  }
 0x1b3   : > { %2180 = vmatprep.subr.bf16.mxu0 %v3862_v11 }
 0x1b5   : > { %1549 = vmatpush1.bf16.msra.mxu1 %v3779_v12  ;;  %v3860_v12 = vld [vmem:[#allocation7 + $0x170] ss:$8 sps:$4 sm:$0xff]  }
 0x1b6   : > { %1550 = vmatprep.subr.bf16.mxu1 %v3784_v15  ;;  %2181 = vmatpush1.bf16.msra.mxu0 %v3860_v12  ;;  %v3863_v15 = vld [vmem:[#allocation7 + $0x180] ss:$8 sps:$4 sm:$0xff]  }
 0x1b7   : > { %2182 = vmatprep.subr.bf16.mxu0 %v3865_v13 }
 0x1b9   : > { %1551 = vmatpush1.bf16.msra.mxu1 %v3782_v16  ;;  %v3868_v16 = vld [vmem:[#allocation7 + $0x194] ss:$8 sps:$4 sm:$0xff]  }
 0x1ba   : > { %1552 = vmatprep.subr.bf16.mxu1 %v3787_v17  ;;  %2183 = vmatpush1.bf16.msra.mxu0 %v3863_v15  ;;  %v3866_v17 = vld [vmem:[#allocation7 + $0x190] ss:$8 sps:$4 sm:$0xff]  }
 0x1bb   : > { %2184 = vmatprep.subr.bf16.mxu0 %v3868_v16 }
 0x1bd   : > { %1553 = vmatpush1.bf16.msra.mxu1 %v3785_v18  ;;  %v3871_v18 = vld [vmem:[#allocation7 + $0x1a4] ss:$8 sps:$4 sm:$0xff]  }
 0x1be   : > { %1554 = vmatprep.subr.bf16.mxu1 %v3790_v20  ;;  %2185 = vmatpush1.bf16.msra.mxu0 %v3866_v17  ;;  %v3874_v20 = vld [vmem:[#allocation7 + $0x1b4] ss:$8 sps:$4 sm:$0xff]  }
 0x1bf   : > { %2186 = vmatprep.subr.bf16.mxu0 %v3871_v18 }
 0x1c1   : > { %1555 = vmatpush1.bf16.msra.mxu1 %v3788_v23  ;;  %v3875_v23 = vld [vmem:[#allocation7 + $0x1c0] ss:$8 sps:$4 sm:$0xff]  }
 0x1c2   : > { %1781 = vmatprep.subr.bf16.mxu1 %v3793_v24  ;;  %2187 = vmatpush1.bf16.msra.mxu0 %v3869_v19  ;;  %v3880_v24 = vld [vmem:[#allocation7 + $0x1d4] ss:$8 sps:$4 sm:$0xff]  }
 0x1c3   : > { %2188 = vmatprep.subr.bf16.mxu0 %v3874_v20 }
 0x1c4   : > { %1557 = vmatmul.mubr.bf16.vlgmr.msra.gmra.mrb[4].mxu1 %v1059_v29  ;;  %v3884_v29 = vld [vmem:[#allocation7 + $0x1f0] ss:$8 sps:$4 sm:$0xff]  }
 0x1c5   : > { %1782 = vmatpush1.bf16.msra.mxu1 %v3791_v28  ;;  %1813 = vmatprep.mubr.bf16.mxu1 %v1618_v32  ;;  %v3886_v28 = vld [vmem:[#allocation7 + $0x1f4] ss:$8 sps:$4 sm:$0xff]  }
 0x1c6   : > { %1783 = vmatprep.subr.bf16.mxu1 %v3796_v31  ;;  %2189 = vmatpush1.bf16.msra.mxu0 %v3872_v21  ;;  %v1828_v31 = vld [vmem:[%s4621_s4] sm:$0x3] }
 0x1c7   : > { %2190 = vmatprep.subr.bf16.mxu0 %v3877_v22  ;;  %v1833_v32 = vrot.slane %v1828_v31, %v4398_v35 }
 0x1c9   : > { %1784 = vmatpush1.bf16.msra.mxu1 %v3794_v33  ;;  %v1837_v33 = vrot.slane %v1828_v31, %v4403_v37 }
 0x1ca   : > { %1785 = vmatprep.subr.bf16.mxu1 %v3799_v34  ;;  %2191 = vmatpush1.bf16.msra.mxu0 %v3875_v23 }
 0x1cb   : > { %2192 = vmatprep.subr.bf16.mxu0 %v3880_v24 }
 0x1cd   : > { %1786 = vmatpush1.bf16.msra.mxu1 %v3797_v14 }
 0x1ce   : > { %1787 = vmatprep.subr.bf16.mxu1 %v3802_v36  ;;  %2193 = vmatpush1.bf16.msra.mxu0 %v3878_v25 }
 0x1cf   : > { %2194 = vmatprep.subr.bf16.mxu0 %v3883_v26 }
 0x1d1   : > { %1788 = vmatpush1.bf16.msra.mxu1 %v3800_v38 }
 0x1d2   : > { %1789 = vmatprep.subr.bf16.mxu1 %v3805_v39  ;;  %2195 = vmatpush1.bf16.msra.mxu0 %v3881_v27 }
 0x1d3   : > { %2196 = vmatprep.subr.bf16.mxu0 %v3886_v28  ;;  %v3887_v28 = vld [vmem:[#allocation7] ss:$8 sps:$4 sm:$0xff]  }
 0x1d5   : > { %1790 = vmatpush1.bf16.msra.mxu1 %v3803_v40 }
 0x1d6   : > { %1791 = vmatprep.subr.bf16.mxu1 %v3808_v41  ;;  %2197 = vmatpush1.bf16.msra.mxu0 %v3884_v29 }
 0x1d7   : > { %2369 = vmatprep.subr.bf16.mxu0 %v3889_v30  ;;  %v3892_v30 = vld [vmem:[#allocation7 + $0x14] ss:$8 sps:$4 sm:$0xff]  }
 0x1d9   : > { %1792 = vmatpush1.bf16.msra.mxu1 %v3806_v42 }
 0x1da   : > { %1793 = vmatprep.subr.bf16.mxu1 %v3811_v43 }
 0x1dd   : > { %1794 = vmatpush1.bf16.msra.mxu1 %v3809_v44 }
 0x1de   : > { %1795 = vmatprep.subr.bf16.mxu1 %v3814_v45 }
 0x1e1   : > { %1796 = vmatpush1.bf16.msra.mxu1 %v3812_v46 }
 0x1e2   : > { %1797 = vmatprep.subr.bf16.mxu1 %v3817_v47 }
 0x1e5   : > { %1798 = vmatpush1.bf16.msra.mxu1 %v3815_v48 }
 0x1e6   : > { %1799 = vmatprep.subr.bf16.mxu1 %v3820_v49 }
 0x1e9   : > { %1800 = vmatpush1.bf16.msra.mxu1 %v3818_v50 }
 0x1ea   : > { %1801 = vmatprep.subr.bf16.mxu1 %v3823_v51 }
 0x1ed   : > { %1802 = vmatpush1.bf16.msra.mxu1 %v3821_v52 }
 0x1ee   : > { %1803 = vmatprep.subr.bf16.mxu1 %v3826_v53 }
 0x1f1   : > { %1804 = vmatpush1.bf16.msra.mxu1 %v3824_v54 }
 0x1f2   : > { %1805 = vmatprep.subr.bf16.mxu1 %v3829_v55 }
 0x1f5   : > { %1806 = vmatpush1.bf16.msra.mxu1 %v3827_v56 }
 0x1f6   : > { %1807 = vmatprep.subr.bf16.mxu1 %v3832_v57 }
 0x1f9   : > { %1808 = vmatpush1.bf16.msra.mxu1 %v3830_v58 }
 0x1fa   : > { %1809 = vmatprep.subr.bf16.mxu1 %v3835_v59 }
 0x1fd   : > { %1810 = vmatpush1.bf16.msra.mxu1 %v3833_v61 }
 0x1fe   : > { %1811 = vmatprep.subr.bf16.mxu1 %v3838_v62 }
 0x201   : > { %1812 = vmatpush1.bf16.msra.mxu1 %v3836_v3 }
 0x204   : > { %1814 = vmatmul.mubr.bf16.vlgmr.msra.gmra.mrb[4].mxu1 %v1615_v6 }
 0x2d7   : > { %v1815_v34 = vpop.f32.mrb[4].mxu1 }
 0x2d8   : > { %v1840_v14 = vadd.f32 %v1833_v32, %v1815_v34  ;;  %v1817_v36 = vpop.f32.mrb[5].mxu1  ;;  %v3895_v34 = vld [vmem:[#allocation7 + $0x24] ss:$8 sps:$4 sm:$0xff]  }
 0x2d9   : > { %v1841_v38 = vadd.f32 %v1837_v33, %v1817_v36  ;;  %v1819_v39 = vpop.f32.mrb[6].mxu1  ;;  %v3898_v36 = vld [vmem:[#allocation7 + $0x34] ss:$8 sps:$4 sm:$0xff]  }
 0x2da   : > { %v1848_v40 = vmin.f32 %v1840_v14, 0.0  ;;  %v1842_v41 = vadd.f32 %v1833_v32, %v1819_v39  ;;  %v1821_v42 = vpop.f32.mrb[7].mxu1  ;;  %vm1844_vm9 = vcmp.gt.f32.partialorder %v1840_v14, 0.0  ;;  %v3901_v39 = vld [vmem:[#allocation7 + $0x44] ss:$8 sps:$4 sm:$0xff]  }
 0x2db   : > { %v1849_v43 = vmin.f32 %v1841_v38, 0.0  ;;  %v1843_v44 = vadd.f32 %v1837_v33, %v1821_v42  ;;  %vm1845_vm10 = vcmp.gt.f32.partialorder %v1841_v38, 0.0  ;;  %v3890_v33 = vld [vmem:[#allocation7 + $0x10] ss:$8 sps:$4 sm:$0xff]  }
 0x2dc   : > { %v1852_v45 = vmul.f32 1.442695, %v1848_v40  ;;  %v1850_v46 = vmin.f32 %v1842_v41, 0.0  ;;  %vm1846_vm11 = vcmp.gt.f32.partialorder %v1842_v41, 0.0  ;;  %v3899_v40 = vld [vmem:[#allocation7 + $0x40] ss:$8 sps:$4 sm:$0xff]  }
 0x2dd   : > { %v1854_v47 = vmul.f32 1.442695, %v1849_v43  ;;  %v1851_v48 = vmin.f32 %v1843_v44, 0.0  ;;  %vm1847_vm12 = vcmp.gt.f32.partialorder %v1843_v44, 0.0  ;;  %v3902_v42 = vld [vmem:[#allocation7 + $0x50] ss:$8 sps:$4 sm:$0xff]  }
 0x2de   : > { %3991 = vpow2.f32 %v1852_v45  ;;  %v1856_v49 = vmul.f32 1.442695, %v1850_v46  ;;  %v3907_v43 = vld [vmem:[#allocation7 + $0x64] ss:$8 sps:$4 sm:$0xff]   ;;  %v3910_v45 = vld [vmem:[#allocation7 + $0x74] ss:$8 sps:$4 sm:$0xff]  }
 0x2df   : > { %3993 = vpow2.f32 %v1854_v47  ;;  %v1858_v50 = vmul.f32 1.442695, %v1851_v48  ;;  %v3908_v46 = vld [vmem:[#allocation7 + $0x70] ss:$8 sps:$4 sm:$0xff]   ;;  %v3913_v47 = vld [vmem:[#allocation7 + $0x84] ss:$8 sps:$4 sm:$0xff]  }
 0x2e0   : > { %3995 = vpow2.f32 %v1856_v49  ;;  %v3911_v48 = vld [vmem:[#allocation7 + $0x80] ss:$8 sps:$4 sm:$0xff]   ;;  %v3916_v49 = vld [vmem:[#allocation7 + $0x94] ss:$8 sps:$4 sm:$0xff]  }
 0x2e1   : > { %3997 = vpow2.f32 %v1858_v50  ;;  %v3914_v50 = vld [vmem:[#allocation7 + $0x90] ss:$8 sps:$4 sm:$0xff]  }
 0x2e8   : > { %v3992_v51 = vpop.eup %3991 }
 0x2e9   : > { %v3994_v52 = vpop.eup %3993  ;;  %v3357_v53 = vadd.f32 -1.0, %v3992_v51  ;;  %v3919_v51 = vld [vmem:[#allocation7 + $0xa4] ss:$8 sps:$4 sm:$0xff]  }
 0x2ea   : > { %v3996_v54 = vpop.eup %3995  ;;  %v3358_v55 = vadd.f32 -1.0, %v3994_v52  ;;  %v3917_v52 = vld [vmem:[#allocation7 + $0xa0] ss:$8 sps:$4 sm:$0xff]  }
 0x2eb   : > { %v3998_v56 = vpop.eup %3997  ;;  %v1864_v57 = vsel %vm1844_vm9, %v1840_v14, %v3357_v53  ;;  %v3359_v58 = vadd.f32 -1.0, %v3996_v54  ;;  %v3893_v14 = vld [vmem:[#allocation7 + $0x20] ss:$8 sps:$4 sm:$0xff]   ;;  %v3922_v53 = vld [vmem:[#allocation7 + $0xb4] ss:$8 sps:$4 sm:$0xff]  }
 0x2ec   : > { %3361 = vst [vmem:[%s4411_s16 + $0x20] sm:$0xff] %v1864_v57  ;;  %v1883_v59 = vrot.slane %v1864_v57, 7  ;;  %v1865_v60 = vsel %vm1845_vm10, %v1841_v38, %v3358_v55  ;;  %v3360_v61 = vadd.f32 -1.0, %v3998_v56  ;;  %v3896_v38 = vld [vmem:[#allocation7 + $0x30] ss:$8 sps:$4 sm:$0xff]  }
 0x2ed   : > { %3362 = vst [vmem:[%s4411_s16 + $0x28] sm:$0xff] %v1865_v60  ;;  %v1884_v62 = vrot.slane %v1865_v60, 7  ;;  %v1866_v63 = vsel %vm1846_vm11, %v1842_v41, %v3359_v58  ;;  %v3904_v41 = vld [vmem:[#allocation7 + $0x54] ss:$8 sps:$4 sm:$0xff]   ;;  %v3920_v54 = vld [vmem:[#allocation7 + $0xb0] ss:$8 sps:$4 sm:$0xff]  }
 0x2ee   : > { %1895 = vst [vmem:[#allocation4] sm:$0xfe] %v1883_v59  ;;  %3363 = vst [vmem:[%s4411_s16 + $0x30] sm:$0xff] %v1866_v63  ;;  %v1885_v2 = vrot.slane %v1866_v63, 7  ;;  %v1867_v3 = vsel %vm1847_vm12, %v1843_v44, %v3360_v61  ;;  %v3905_v44 = vld [vmem:[#allocation7 + $0x60] ss:$8 sps:$4 sm:$0xff]  }
 0x2ef   : > { %1896 = vst [vmem:[#allocation4 + $0x8] sm:$0xfe] %v1884_v62  ;;  %3364 = vst [vmem:[%s4411_s16 + $0x38] sm:$0xff] %v1867_v3  ;;  %v1887_v0 = vrot.slane %v1867_v3, 7  ;;  %v3925_v55 = vld [vmem:[#allocation7 + $0xc4] ss:$8 sps:$4 sm:$0xff]  }
 0x2f0   : > { %v4443_v4 = vsel %vm1036_vm5, %v1883_v59, %v1885_v2  ;;  %1899 = vst [vmem:[#allocation4 + $0x20] sm:$0x1] %v1885_v2  ;;  %v3923_v56 = vld [vmem:[#allocation7 + $0xc0] ss:$8 sps:$4 sm:$0xff]   ;;  %v3928_v57 = vld [vmem:[#allocation7 + $0xd4] ss:$8 sps:$4 sm:$0xff]  }
 0x2f1   : > { %v4446_v5 = vsel %vm1036_vm5, %v1884_v62, %v1887_v0  ;;  %1900 = vst [vmem:[#allocation4 + $0x28] sm:$0x1] %v1887_v0  ;;  %v3926_v58 = vld [vmem:[#allocation7 + $0xd0] ss:$8 sps:$4 sm:$0xff]   ;;  %v3931_v59 = vld [vmem:[#allocation7 + $0xe4] ss:$8 sps:$4 sm:$0xff]  }
 0x2f2   : > { %v3929_v60 = vld [vmem:[#allocation7 + $0xe0] ss:$8 sps:$4 sm:$0xff]   ;;  %v3934_v62 = vld [vmem:[#allocation7 + $0xf4] ss:$8 sps:$4 sm:$0xff]   ;;  %v3932_v3 = vld [vmem:[#allocation7 + $0xf0] ss:$8 sps:$4 sm:$0xff]  }
 0x2f3   : > { %v3937_v0 = vld [vmem:[#allocation7 + $0x204] ss:$8 sps:$4 sm:$0xff]  }
 0x2f5   : > { %v1939_v6 = vld [vmem:[#allocation4] sm:$0xfe] }
 0x2f6   : > { %v1940_v7 = vld [vmem:[#allocation4 + $0x8] sm:$0xfe]  ;;  %v1943_v8 = vpack.c.bf16 %v4443_v4, %v1939_v6 }
 0x2f7   : > { %v1944_v9 = vpack.c.bf16 %v4446_v5, %v1940_v7  ;;  %v1941_v10 = vld [vmem:[#allocation4 + $0x20] sm:$0x1]  ;;  %v1902_v27 = vld [vmem:[#allocation4 + $0x8] sm:$0xff] }
 0x2f8   : > { %v1942_v11 = vld [vmem:[#allocation4 + $0x28] sm:$0x1]  ;;  %v1945_v12 = vpack.c.bf16 %v1941_v10, %v1941_v10  ;;  %v1983_v13 = vshll.u32 %v1943_v8, 16  ;;  %v1981_v17 = vshrl.u32 %v1943_v8, 16  ;;  %v1906_v32 = vpack.c.bf16 %v4446_v5, %v1902_v27  ;;  %v2413_v63 = vld [vmem:[#allocation4 + $0x8] sm:$0xfc] }
 0x2f9   : > { %v1946_v15 = vpack.c.bf16 %v1942_v11, %v1942_v11  ;;  %v1995_v16 = vshll.u32 %v1944_v9, 16  ;;  %v1993_v20 = vshrl.u32 %v1944_v9, 16  ;;  %v2415_v61 = vld [vmem:[#allocation4 + $0x28] sm:$0x3]  ;;  %v2417_v6 = vpack.c.bf16 %v4446_v5, %v2413_v63  ;;  %v1901_v7 = vld [vmem:[#allocation4] sm:$0xff] }
 0x2fa   : > { %v1985_v18 = vrot.slane %v1983_v13, 1  ;;  %v1988_v19 = vshll.u32 %v1945_v12, 16  ;;  %v2419_v2 = vpack.c.bf16 %v2415_v61, %v2415_v61  ;;  %v3935_v9 = vld [vmem:[#allocation7 + $0x200] ss:$8 sps:$4 sm:$0xff]   ;;  %v1905_v10 = vpack.c.bf16 %v4443_v4, %v1901_v7  ;;  %v3940_v12 = vld [vmem:[#allocation7 + $0x214] ss:$8 sps:$4 sm:$0xff]  }
 0x2fb   : > { %v1997_v21 = vrot.slane %v1995_v16, 1  ;;  %v2000_v22 = vshll.u32 %v1946_v15, 16  ;;  %v2460_v11 = vrot.slane %v2417_v6, 1  ;;  %v3938_v15 = vld [vmem:[#allocation7 + $0x210] ss:$8 sps:$4 sm:$0xff]  }
 0x2fc   : > { %v1986_v23 = vor.u32 %v1985_v18, %v1981_v17  ;;  %v1990_v24 = vrot.slane %v1988_v19, 1  ;;  %v2461_v8 = vrot.slane %v2419_v2, 1  ;;  %v3943_v16 = vld [vmem:[#allocation7 + $0x224] ss:$8 sps:$4 sm:$0xff]   ;;  %v3941_v17 = vld [vmem:[#allocation7 + $0x220] ss:$8 sps:$4 sm:$0xff]  }
 0x2fd   : > { %v1998_v25 = vor.u32 %v1997_v21, %v1993_v20  ;;  %v2002_v26 = vrot.slane %v2000_v22, 1  ;;  %v3946_v5 = vld [vmem:[#allocation7 + $0x234] ss:$8 sps:$4 sm:$0xff]   ;;  %v3944_v18 = vld [vmem:[#allocation7 + $0x230] ss:$8 sps:$4 sm:$0xff]  }
 0x2fe   : > { %v1991_v31 = vsel %vm1134_vm7, %v1986_v23, %v1990_v24  ;;  %v2462_v13 = vsel %vm1612_vm8, %v2460_v11, %v2461_v8  ;;  %v3949_v19 = vld [vmem:[#allocation7 + $0x244] ss:$8 sps:$4 sm:$0xff]   ;;  %v3947_v20 = vld [vmem:[#allocation7 + $0x240] ss:$8 sps:$4 sm:$0xff]   ;;  %v3952_v21 = vld [vmem:[#allocation7 + $0x254] ss:$8 sps:$4 sm:$0xff]  }
 0x2ff   : > { %v2003_v29 = vsel %vm1134_vm7, %v1998_v25, %v2002_v26  ;;  %v3950_v22 = vld [vmem:[#allocation7 + $0x250] ss:$8 sps:$4 sm:$0xff]   ;;  %v3955_v23 = vld [vmem:[#allocation7 + $0x264] ss:$8 sps:$4 sm:$0xff]   ;;  %v3953_v24 = vld [vmem:[#allocation7 + $0x260] ss:$8 sps:$4 sm:$0xff]  }
 0x300   : > { %2198 = vmatprep.mubr.bf16.mxu0 %v2003_v29  ;;  %v3958_v25 = vld [vmem:[#allocation7 + $0x274] ss:$8 sps:$4 sm:$0xff]   ;;  %v3956_v26 = vld [vmem:[#allocation7 + $0x270] ss:$8 sps:$4 sm:$0xff]   ;;  %v3961_v27 = vld [vmem:[#allocation7 + $0x284] ss:$8 sps:$4 sm:$0xff]  }
 0x301   : > { %2199 = vmatmul.mubr.bf16.vlgmr.msra.gmra.mrb[4].mxu0 %v1991_v31  ;;  %v3964_v29 = vld [vmem:[#allocation7 + $0x294] ss:$8 sps:$4 sm:$0xff]   ;;  %v3967_v31 = vld [vmem:[#allocation7 + $0x2a4] ss:$8 sps:$4 sm:$0xff]  }
 0x302   : > { %2370 = vmatpush1.bf16.msra.mxu0 %v3887_v28  ;;  %2401 = vmatprep.mubr.bf16.mxu0 %v1906_v32  ;;  %v3959_v28 = vld [vmem:[#allocation7 + $0x280] ss:$8 sps:$4 sm:$0xff]   ;;  %v2750_v63 = vld [vmem:[%s4628_s11 + $0xa8] sm:$0xff]  ;;  %v2751_v7 = vld [vmem:[%s4628_s11 + $0xb0] sm:$0xff] }
 0x303   : > { %2371 = vmatprep.subr.bf16.mxu0 %v3892_v30  ;;  %v3962_v30 = vld [vmem:[#allocation7 + $0x290] ss:$8 sps:$4 sm:$0xff]   ;;  %v3965_v32 = vld [vmem:[#allocation7 + $0x2a0] ss:$8 sps:$4 sm:$0xff]  }
 0x304   : > { %v2752_v8 = vld [vmem:[%s4628_s11 + $0xb8] sm:$0xff] }
 0x305   : > { %v2736_v11 = vld [vmem:[%s4628_s11 + $0x38] sm:$0xff] }
 0x306   : > { %2372 = vmatpush1.bf16.msra.mxu0 %v3890_v33  ;;  %v3970_v33 = vld [vmem:[#allocation7 + $0x2b4] ss:$8 sps:$4 sm:$0xff]  }
 0x307   : > { %2373 = vmatprep.subr.bf16.mxu0 %v3895_v34  ;;  %v3968_v34 = vld [vmem:[#allocation7 + $0x2b0] ss:$8 sps:$4 sm:$0xff]  }
 0x30a   : > { %2374 = vmatpush1.bf16.msra.mxu0 %v3893_v14  ;;  %v3973_v14 = vld [vmem:[#allocation7 + $0x2c4] ss:$8 sps:$4 sm:$0xff]  }
 0x30b   : > { %2375 = vmatprep.subr.bf16.mxu0 %v3898_v36  ;;  %v3971_v36 = vld [vmem:[#allocation7 + $0x2c0] ss:$8 sps:$4 sm:$0xff]  }
 0x30e   : > { %2376 = vmatpush1.bf16.msra.mxu0 %v3896_v38  ;;  %v3976_v38 = vld [vmem:[#allocation7 + $0x2d4] ss:$8 sps:$4 sm:$0xff]  }
 0x30f   : > { %2377 = vmatprep.subr.bf16.mxu0 %v3901_v39  ;;  %v3974_v39 = vld [vmem:[#allocation7 + $0x2d0] ss:$8 sps:$4 sm:$0xff]  }
 0x312   : > { %2378 = vmatpush1.bf16.msra.mxu0 %v3899_v40  ;;  %v3979_v40 = vld [vmem:[#allocation7 + $0x2e4] ss:$8 sps:$4 sm:$0xff]  }
 0x313   : > { %2379 = vmatprep.subr.bf16.mxu0 %v3904_v41  ;;  %v2414_v41 = vld [vmem:[#allocation4 + $0x20] sm:$0x3] }
 0x316   : > { %2380 = vmatpush1.bf16.msra.mxu0 %v3902_v42  ;;  %v3977_v42 = vld [vmem:[#allocation7 + $0x2e0] ss:$8 sps:$4 sm:$0xff]  }
 0x317   : > { %2381 = vmatprep.subr.bf16.mxu0 %v3907_v43  ;;  %v3982_v43 = vld [vmem:[#allocation7 + $0x2f4] ss:$8 sps:$4 sm:$0xff]  }
 0x31a   : > { %2382 = vmatpush1.bf16.msra.mxu0 %v3905_v44  ;;  %v2412_v44 = vld [vmem:[#allocation4] sm:$0xfc] }
 0x31b   : > { %2383 = vmatprep.subr.bf16.mxu0 %v3910_v45  ;;  %v2418_v45 = vpack.c.bf16 %v2414_v41, %v2414_v41 }
 0x31e   : > { %2384 = vmatpush1.bf16.msra.mxu0 %v3908_v46  ;;  %v3980_v46 = vld [vmem:[#allocation7 + $0x2f0] ss:$8 sps:$4 sm:$0xff]  }
 0x31f   : > { %2385 = vmatprep.subr.bf16.mxu0 %v3913_v47  ;;  %v2416_v47 = vpack.c.bf16 %v4443_v4, %v2412_v44  ;;  %v2729_v4 = vld [vmem:[%s4628_s11] sm:$0xff] }
 0x322   : > { %2386 = vmatpush1.bf16.msra.mxu0 %v3911_v48  ;;  %v2458_v48 = vrot.slane %v2418_v45, 1 }
 0x323   : > { %2387 = vmatprep.subr.bf16.mxu0 %v3916_v49  ;;  %v2457_v49 = vrot.slane %v2416_v47, 1 }
 0x326   : > { %2388 = vmatpush1.bf16.msra.mxu0 %v3914_v50  ;;  %v2459_v50 = vsel %vm1612_vm8, %v2457_v49, %v2458_v48 }
 0x327   : > { %2389 = vmatprep.subr.bf16.mxu0 %v3919_v51  ;;  %v2745_v51 = vld [vmem:[%s4628_s11 + $0x80] sm:$0xff] }
 0x32a   : > { %2390 = vmatpush1.bf16.msra.mxu0 %v3917_v52  ;;  %v2746_v52 = vld [vmem:[%s4628_s11 + $0x88] sm:$0xff] }
 0x32b   : > { %2391 = vmatprep.subr.bf16.mxu0 %v3922_v53  ;;  %v3528_v53 = vpack.c.bf16 %v2746_v52, %v2745_v51 }
 0x32d   : > { %3529 = vmatprep.subr.bf16.mxu1 %v3528_v53 }
 0x32e   : > { %2392 = vmatpush1.bf16.msra.mxu0 %v3920_v54  ;;  %v2730_v54 = vld [vmem:[%s4628_s11 + $0x8] sm:$0xff] }
 0x32f   : > { %2393 = vmatprep.subr.bf16.mxu0 %v3925_v55  ;;  %v3530_v55 = vpack.c.bf16 %v2730_v54, %v2729_v4 }
 0x331   : > { %3531 = vmatpush3.bf16.msra.mxu1 %v3530_v55 }
 0x332   : > { %2394 = vmatpush1.bf16.msra.mxu0 %v3923_v56  ;;  %v2747_v56 = vld [vmem:[%s4628_s11 + $0x90] sm:$0xff] }
 0x333   : > { %2395 = vmatprep.subr.bf16.mxu0 %v3928_v57  ;;  %v2748_v57 = vld [vmem:[%s4628_s11 + $0x98] sm:$0xff] }
 0x336   : > { %2396 = vmatpush1.bf16.msra.mxu0 %v3926_v58  ;;  %v3532_v58 = vpack.c.bf16 %v2748_v57, %v2747_v56 }
 0x337   : > { %2397 = vmatprep.subr.bf16.mxu0 %v3931_v59  ;;  %v2731_v59 = vld [vmem:[%s4628_s11 + $0x10] sm:$0xff] }
 0x338   : > { %3533 = vmatprep.subr.bf16.mxu1 %v3532_v58 }
 0x33a   : > { %2398 = vmatpush1.bf16.msra.mxu0 %v3929_v60  ;;  %v2732_v60 = vld [vmem:[%s4628_s11 + $0x18] sm:$0xff] }
 0x33b   : > { %2399 = vmatprep.subr.bf16.mxu0 %v3934_v62  ;;  %v3534_v61 = vpack.c.bf16 %v2732_v60, %v2731_v59  ;;  %v2749_v62 = vld [vmem:[%s4628_s11 + $0xa0] sm:$0xff] }
 0x33c   : > { %v3536_v2 = vpack.c.bf16 %v2750_v63, %v2749_v62 }
 0x33d   : > { %3535 = vmatpush3.bf16.msra.mxu1 %v3534_v61 }
 0x33e   : > { %2400 = vmatpush1.bf16.msra.mxu0 %v3932_v3  ;;  %v2733_v3 = vld [vmem:[%s4628_s11 + $0x20] sm:$0xff]  ;;  %3537 = vmatprep.subr.bf16.mxu1 %v3536_v2 }
 0x33f   : > { %2625 = vmatprep.subr.bf16.mxu0 %v3937_v0  ;;  %v2734_v0 = vld [vmem:[%s4628_s11 + $0x28] sm:$0xff] }
 0x340   : > { %v3538_v6 = vpack.c.bf16 %v2734_v0, %v2733_v3 }
 0x341   : > { %2402 = vmatmul.mubr.bf16.vlgmr.msra.gmra.mrb[4].mxu0 %v1905_v10  ;;  %v2735_v10 = vld [vmem:[%s4628_s11 + $0x30] sm:$0xff] }
 0x342   : > { %2626 = vmatpush1.bf16.msra.mxu0 %v3935_v9  ;;  %2657 = vmatprep.mubr.bf16.mxu0 %v2462_v13  ;;  %v3540_v9 = vpack.c.bf16 %v2752_v8, %v2751_v7  ;;  %v2753_v13 = vld [vmem:[%s4628_s11 + $0xc0] sm:$0xff] }
 0x343   : > { %2627 = vmatprep.subr.bf16.mxu0 %v3940_v12  ;;  %3539 = vmatpush3.bf16.msra.mxu1 %v3538_v6  ;;  %v3542_v12 = vpack.c.bf16 %v2736_v11, %v2735_v10 }
 0x344   : > { %3541 = vmatprep.subr.bf16.mxu1 %v3540_v9 }
 0x346   : > { %2628 = vmatpush1.bf16.msra.mxu0 %v3938_v15  ;;  %v2754_v15 = vld [vmem:[%s4628_s11 + $0xc8] sm:$0xff] }
 0x347   : > { %2629 = vmatprep.subr.bf16.mxu0 %v3943_v16  ;;  %3543 = vmatpush3.bf16.msra.mxu1 %v3542_v12  ;;  %v3544_v16 = vpack.c.bf16 %v2754_v15, %v2753_v13 }
 0x349   : > { %3545 = vmatprep.subr.bf16.mxu1 %v3544_v16 }
 0x34a   : > { %2630 = vmatpush1.bf16.msra.mxu0 %v3941_v17  ;;  %v2737_v17 = vld [vmem:[%s4628_s11 + $0x40] sm:$0xff] }
 0x34b   : > { %2631 = vmatprep.subr.bf16.mxu0 %v3946_v5  ;;  %v2738_v5 = vld [vmem:[%s4628_s11 + $0x48] sm:$0xff] }
 0x34e   : > { %2632 = vmatpush1.bf16.msra.mxu0 %v3944_v18  ;;  %v3546_v18 = vpack.c.bf16 %v2738_v5, %v2737_v17 }
 0x34f   : > { %2633 = vmatprep.subr.bf16.mxu0 %v3949_v19  ;;  %v2755_v19 = vld [vmem:[%s4628_s11 + $0xd0] sm:$0xff] }
 0x350   : > { %3547 = vmatpush3.bf16.msra.mxu1 %v3546_v18 }
 0x352   : > { %2634 = vmatpush1.bf16.msra.mxu0 %v3947_v20  ;;  %v2756_v20 = vld [vmem:[%s4628_s11 + $0xd8] sm:$0xff] }
 0x353   : > { %2635 = vmatprep.subr.bf16.mxu0 %v3952_v21  ;;  %v3548_v21 = vpack.c.bf16 %v2756_v20, %v2755_v19 }
 0x355   : > { %3549 = vmatprep.subr.bf16.mxu1 %v3548_v21 }
 0x356   : > { %2636 = vmatpush1.bf16.msra.mxu0 %v3950_v22  ;;  %v2739_v22 = vld [vmem:[%s4628_s11 + $0x50] sm:$0xff] }
 0x357   : > { %2637 = vmatprep.subr.bf16.mxu0 %v3955_v23  ;;  %v2740_v23 = vld [vmem:[%s4628_s11 + $0x58] sm:$0xff] }
 0x35a   : > { %2638 = vmatpush1.bf16.msra.mxu0 %v3953_v24  ;;  %v2757_v24 = vld [vmem:[%s4628_s11 + $0xe0] sm:$0xff] }
 0x35b   : > { %2639 = vmatprep.subr.bf16.mxu0 %v3958_v25  ;;  %v3550_v25 = vpack.c.bf16 %v2740_v23, %v2739_v22  ;;  %v2832_v22 = vld [vmem:[%s4624_s7] sm:$0xff]  ;;  %v2833_v23 = vld [vmem:[%s4624_s7 + $0x8] sm:$0xff] }
 0x35d   : > { %3551 = vmatpush3.bf16.msra.mxu1 %v3550_v25  ;;  %v4089_v25 = vmov 0.0|0.0  }
 0x35e   : > { %2640 = vmatpush1.bf16.msra.mxu0 %v3956_v26  ;;  %v2758_v26 = vld [vmem:[%s4628_s11 + $0xe8] sm:$0xff] }
 0x35f   : > { %2641 = vmatprep.subr.bf16.mxu0 %v3961_v27  ;;  %v2741_v27 = vld [vmem:[%s4628_s11 + $0x60] sm:$0xff] }
 0x362   : > { %2642 = vmatpush1.bf16.msra.mxu0 %v3959_v28  ;;  %v2742_v28 = vld [vmem:[%s4628_s11 + $0x68] sm:$0xff] }
 0x363   : > { %2643 = vmatprep.subr.bf16.mxu0 %v3964_v29  ;;  %v3552_v29 = vpack.c.bf16 %v2758_v26, %v2757_v24  ;;  %v3561_v24 = vpack.c.bf16 %v2833_v23, %v2832_v22 }
 0x365   : > { %3553 = vmatprep.subr.bf16.mxu1 %v3552_v29 }
 0x366   : > { %2644 = vmatpush1.bf16.msra.mxu0 %v3962_v30  ;;  %v2759_v30 = vld [vmem:[%s4628_s11 + $0xf0] sm:$0xff] }
 0x367   : > { %2645 = vmatprep.subr.bf16.mxu0 %v3967_v31  ;;  %v2760_v31 = vld [vmem:[%s4628_s11 + $0xf8] sm:$0xff] }
 0x36a   : > { %2646 = vmatpush1.bf16.msra.mxu0 %v3965_v32  ;;  %v3554_v32 = vpack.c.bf16 %v2742_v28, %v2741_v27 }
 0x36b   : > { %2647 = vmatprep.subr.bf16.mxu0 %v3970_v33  ;;  %v3556_v33 = vpack.c.bf16 %v2760_v31, %v2759_v30  ;;  %v2910_v30 = vld [vmem:[%s4626_s9] sm:$0xf] }
 0x36c   : > { %3555 = vmatpush3.bf16.msra.mxu1 %v3554_v32  ;;  %v2834_v31 = vld [vmem:[%s4625_s8] sm:$0x1] }
 0x36d   : > { %3557 = vmatprep.subr.bf16.mxu1 %v3556_v33 }
 0x36e   : > { %2648 = vmatpush1.bf16.msra.mxu0 %v3968_v34  ;;  %v2743_v34 = vld [vmem:[%s4628_s11 + $0x70] sm:$0xff] }
 0x36f   : > { %2649 = vmatprep.subr.bf16.mxu0 %v3973_v14  ;;  %v2744_v14 = vld [vmem:[%s4628_s11 + $0x78] sm:$0xff] }
 0x372   : > { %2650 = vmatpush1.bf16.msra.mxu0 %v3971_v36  ;;  %v3558_v36 = vpack.c.bf16 %v2744_v14, %v2743_v34 }
 0x373   : > { %2651 = vmatprep.subr.bf16.mxu0 %v3976_v38  ;;  %v2672_v38 = vld [vmem:[%s4623_s6] sm:$0x3] }
 0x374   : > { %3559 = vmatpush3.bf16.msra.mxu1 %v3558_v36  ;;  %v2997_v36 = vld [vmem:[%s4629_s12 + $0x8] sm:$0xff] }
 0x375   : > { %3560 = vmatprep.subr.bf16.mxu1 %v4089_v25 }
 0x376   : > { %2652 = vmatpush1.bf16.msra.mxu0 %v3974_v39  ;;  %v2677_v39 = vrot.slane %v2672_v38, %v4398_v35 }
 0x377   : > { %2653 = vmatprep.subr.bf16.mxu0 %v3979_v40  ;;  %v2681_v40 = vrot.slane %v2672_v38, %v4403_v37  ;;  %v2999_v38 = vld [vmem:[%s4629_s12 + $0x18] sm:$0xff] }
 0x37a   : > { %2654 = vmatpush1.bf16.msra.mxu0 %v3977_v42 }
 0x37b   : > { %2655 = vmatprep.subr.bf16.mxu0 %v3982_v43 }
 0x37e   : > { %2656 = vmatpush1.bf16.msra.mxu0 %v3980_v46 }
 0x381   : > { %2658 = vmatmul.mubr.bf16.vlgmr.msra.gmra.mrb[4].mxu0 %v2459_v50 }
 0x454   : > { %v2659_v41 = vpop.f32.mrb[4].mxu0 }
 0x455   : > { %v2684_v42 = vadd.f32 %v2677_v39, %v2659_v41  ;;  %v2661_v43 = vpop.f32.mrb[5].mxu0  ;;  %v2998_v41 = vld [vmem:[%s4629_s12 + $0x10] sm:$0xff] }
 0x456   : > { %v2685_v44 = vadd.f32 %v2681_v40, %v2661_v43  ;;  %v2663_v45 = vpop.f32.mrb[6].mxu0 }
 0x457   : > { %v2692_v46 = vmin.f32 %v2684_v42, 0.0  ;;  %v2686_v47 = vadd.f32 %v2677_v39, %v2663_v45  ;;  %v2665_v48 = vpop.f32.mrb[7].mxu0  ;;  %vm2688_vm13 = vcmp.gt.f32.partialorder %v2684_v42, 0.0  ;;  %v2996_v39 = vld [vmem:[%s4629_s12] sm:$0xff] }
 0x458   : > { %v2693_v49 = vmin.f32 %v2685_v44, 0.0  ;;  %v2687_v50 = vadd.f32 %v2681_v40, %v2665_v48  ;;  %vm2689_vm15 = vcmp.gt.f32.partialorder %v2685_v44, 0.0  ;;  %v3563_v40 = vpack.c.bf16 %v2999_v38, %v2997_v36 }
 0x459   : > { %v2696_v51 = vmul.f32 1.442695, %v2692_v46  ;;  %v2694_v52 = vmin.f32 %v2686_v47, 0.0  ;;  %vm2690_vm14 = vcmp.gt.f32.partialorder %v2686_v47, 0.0 }
 0x45a   : > { %v2698_v53 = vmul.f32 1.442695, %v2693_v49  ;;  %v2695_v4 = vmin.f32 %v2687_v50, 0.0  ;;  %vm2691_vm0 = vcmp.gt.f32.partialorder %v2687_v50, 0.0 }
 0x45b   : > { %3999 = vpow2.f32 %v2696_v51  ;;  %v2700_v54 = vmul.f32 1.442695, %v2694_v52 }
 0x45c   : > { %4001 = vpow2.f32 %v2698_v53  ;;  %v2702_v55 = vmul.f32 1.442695, %v2695_v4 }
 0x45d   : > { %4003 = vpow2.f32 %v2700_v54 }
 0x45e   : > { %4005 = vpow2.f32 %v2702_v55 }
 0x465   : > { %v4000_v37 = vpop.eup %3999 }
 0x466   : > { %v4002_v56 = vpop.eup %4001  ;;  %v3461_v57 = vadd.f32 -1.0, %v4000_v37 }
 0x467   : > { %v4004_v58 = vpop.eup %4003  ;;  %v3462_v59 = vadd.f32 -1.0, %v4002_v56 }
 0x468   : > { %v4006_v60 = vpop.eup %4005  ;;  %v3463_v61 = vadd.f32 -1.0, %v4004_v58  ;;  %v4559_v63 = vsel %vm2688_vm13, %v2684_v42, %v3461_v57  ;;  %v3565_v42 = vpack.c.bf16 %v2998_v41, %v2996_v39 }
 0x469   : > { %v3464_v62 = vadd.f32 -1.0, %v4006_v60  ;;  %v4563_v3 = vsel %vm2689_vm15, %v2685_v44, %v3462_v59 }
 0x46a   : > { %v4561_v2 = vsel %vm2690_vm14, %v2686_v47, %v3463_v61 }
 0x46b   : > { %v2712_v0 = vadd.f32 %v4561_v2, %v4559_v63  ;;  %v4567_v6 = vsel %vm2691_vm0, %v2687_v50, %v3464_v62 }
 0x46c   : > { %v2719_v7 = vadd.f32 %v4567_v6, %v4563_v3 }
 0x46d   : > { %v2713_v8 = vrot.slane %v2712_v0, 4 }
 0x46e   : > { %v2720_v9 = vrot.slane %v2719_v7, 4 }
 0x46f   : > { %v2714_v10 = vadd.f32 %v2713_v8, %v2712_v0 }
 0x470   : > { %v2721_v11 = vadd.f32 %v2720_v9, %v2719_v7 }
 0x471   : > { %v2715_v12 = vrot.slane %v2714_v10, 2 }
 0x472   : > { %v2722_v13 = vrot.slane %v2721_v11, 2 }
 0x473   : > { %v2716_v15 = vadd.f32 %v2715_v12, %v2714_v10 }
 0x474   : > { %v2723_v16 = vadd.f32 %v2722_v13, %v2721_v11 }
 0x475   : > { %v2717_v17 = vrot.slane %v2716_v15, 1 }
 0x476   : > { %v2724_v5 = vrot.slane %v2723_v16, 1 }
 0x477   : > { %v2718_v18 = vadd.f32 %v2717_v17, %v2716_v15 }
 0x478   : > { %v2725_v19 = vadd.f32 %v2724_v5, %v2723_v16 }
 0x479   : > { %v2727_v21 = vmul.f32 0.0625, %v2718_v18 }
 0x47a   : > { %v2728_v20 = vmul.f32 0.0625, %v2725_v19 }
 0x47c   : > { %2825 = vmatprep.mubr.f32.mxu1 %v2728_v20 }
 0x47d   : > { %2826 = vmatmul.mubr.f32.vlgmr.msra.gmra.mrb[8].mxu1 %v2727_v21 }
 0x47e   : > { %3562 = vmatpush3.bf16.msra.mxu1 %v3561_v24  ;;  %3520 = vmatprep.mubr.msk.f32.mxu1 %vm4090_vm1, %v4088_v1 }
 0x47f   : > { %3523 = vmatprep.subr.mxu1 %v4088_v1 }
 0x550   : > { %v3508_v26 = vpop.f32.mrb[8].mxu1 }
 0x551   : > { %v3509_v27 = vpop.f32.mrb[9].mxu1 }
 0x552   : > { %v3510_v28 = vadd.f32 %v3509_v27, %v3508_v26 }
 0x554   : > { %v2831_v29 = vmul.f32 0.0625, %v3510_v28 }
 0x556   : > { %3521 = vmatmul.mubr.msk.f32.vlgmr.msra.gmra.mrb[10].mxu1 %vm2835_vm2, %v2831_v29 }
 0x557   : > { %3525 = vmatprep.mubr.msk.f32.mxu1 %vm4090_vm1, %v4088_v1  ;;  %3524 = vmatpush3.msk.msra.mxu1 %vm2916_vm3, %v2910_v30 }
 0x558   : > { %3564 = vmatprep.subr.bf16.mxu1 %v3563_v40 }
 0x629   : > { %v2905_v32 = vpop.f32.mrb[10].mxu1 }
 0x62a   : > { %v2906_v33 = vadd.f32 %v2905_v32, %v2834_v31  ;;  %v3522_v34 = vpop.f32.mrb[11].mxu1 }
 0x62c   : > { %v2909_v14 = vmax.f32 %v2906_v33, 0.0 }
 0x62e   : > { %3526 = vmatmul.mubr.msk.f32.vlgmr.msra.gmra.mrb[12].mxu1 %vm2912_vm4, %v2909_v14 }
 0x62f   : > { %3067 = vmatprep.mubr.f32.mxu1 %v4088_v1  ;;  %3566 = vmatpush1.bf16.msra.mxu1 %v3565_v42  ;;  %v2911_v1 = vld [vmem:[%s4627_s10] sm:$0x1] }
 0x701   : > { %v2986_v43 = vpop.f32.mrb[12].mxu1 }
 0x702   : > { %v2987_v44 = vadd.f32 %v2986_v43, %v2911_v1  ;;  %v3527_v45 = vpop.f32.mrb[13].mxu1 }
 0x704   : > { %v2990_v46 = vsub.f32 0.0, %v2987_v44 }
 0x706   : > { %v2991_v47 = vmul.f32 1.442695, %v2990_v46 }
 0x708   : > { %4007 = vpow2.f32 %v2991_v47 }
 0x712   : > { %v4008_v48 = vpop.eup %4007 }
 0x713   : > { %v2993_v49 = vadd.f32 1.0, %v4008_v48 }
 0x715   : > { %4009 = vrcp.f32 %v2993_v49 }
 0x71f   : > { %v4010_v50 = vpop.eup %4009 }
 0x720   : > { %3468 = vmatmul.mubr.msk.f32.vlgmr.msra.gmra.mrb[14].mxu1 %vm2835_vm2, %v4010_v50 }
 0x7f3   : > { %v3069_v51 = vpop.f32.mrb[14].mxu1 }
 0x7f4   : > { %v3077_v52 = vrot.slane %v3069_v51, %v4398_v35  ;;  %v3071_v53 = vpop.f32.mrb[15].mxu1 }
 0x7f5   : > { %v3081_v4 = vrot.slane %v3071_v53, %v4398_v35 }
 0x7f6   : > { %v3082_v54 = vmul.f32 %v3077_v52, %v4559_v63  ;;  %v3084_v55 = vmul.f32 %v3077_v52, %v4561_v2 }
 0x7f7   : > { %v3083_v37 = vmul.f32 %v3081_v4, %v4563_v3  ;;  %v3085_v56 = vmul.f32 %v3081_v4, %v4567_v6 }
 0x7f8   : > { %3469 = vst [vmem:[%s4411_s16 + $0x40] sm:$0xff] %v3082_v54  ;;  %3471 = vst [vmem:[%s4411_s16 + $0x50] sm:$0xff] %v3084_v55 }
 0x7f9   : > { %3470 = vst [vmem:[%s4411_s16 + $0x48] sm:$0xff] %v3083_v37  ;;  %3472 = vst [vmem:[%s4411_s16 + $0x58] sm:$0xff] %v3085_v56 }
 0x7fa PF: > { %s25_s25 = sadd.s32 1, %s4081_s25  }
 0x7fb   : > { %p22_p5 = scmp.ge.s32.totalorder %s25_s25, 4  }
 0x7fd   :  { %24 = sbr.rel (!%p22_p5) target bundleno = 2 (0x2), region = 121 }
 0x804   :  { %3112 = vsyncpa [#allocation6], 1 }
 0x805   :  { %3114 = vsyncpa [#allocation6 + $0x1], 1 }
 0x806   :  { %3115 = vsyncpa [#allocation8], 1 }

</bundles_post_ra>
